<compile_context>
chip_gen: v7x
topology: tpu7x:2x2x1
jax: 0.10.0
libtpu: 0.0.40
codegen_flags: <defaults>
</compile_context>

<pallas_src>
import functools
import math

import jax
import jax.numpy as jnp
from jax.experimental import pallas as pl
from jax.experimental.pallas import tpu as pltpu

MAX_LENGTH = 50  # unused by the actual loop (kept for parity with the PyTorch module)


# ----------------------------- in-kernel helpers -----------------------------

def _mm(a, b):
    return jnp.dot(a, b, preferred_element_type=jnp.float32)


def _gru_cell(x, h, wi, wh, b):
    """PyTorch GRU cell math with per-gate weight stacks.
    wi: (3, Din, H), wh: (3, H, H) for gates (r, z, n); b: (4, 1, H) = (b_r, b_z, b_in, b_hn)."""
    r = jax.nn.sigmoid(_mm(x, wi[0]) + _mm(h, wh[0]) + b[0])
    z = jax.nn.sigmoid(_mm(x, wi[1]) + _mm(h, wh[1]) + b[1])
    n = jnp.tanh(_mm(x, wi[2]) + b[2] + r * (_mm(h, wh[2]) + b[3]))
    return (1.0 - z) * n + z * h


# ----------------------------- Pallas kernels -----------------------------

def _bigru_layer_kernel(len_ref, x_ref, wi_ref, wh_ref, b_ref,
                        out_ref, hfin_ref, h_scr):
    """One bidirectional GRU layer, fused over grid=(direction, time).
    len: (B,1) int32 resident; x block: (1,B,Din) at the actual time step; weights are
    per-direction stacks (resident per direction).  Hidden carry lives in VMEM scratch."""
    d = pl.program_id(0)
    t = pl.program_id(1)
    T = pl.num_programs(1)

    @pl.when(t == 0)
    def _():
        h_scr[...] = jnp.zeros_like(h_scr)          # each direction starts from h = 0

    h = h_scr[...]                                  # (B, H) carried hidden
    x = x_ref[0]                                    # (B, Din)
    wi = wi_ref[0]                                  # (3, Din, H)
    wh = wh_ref[0]                                  # (3, H, H)
    b = b_ref[0]                                    # (4, 1, H)

    h_new = _gru_cell(x, h, wi, wh, b)

    # Length masking (emulates pack_padded/pad_packed_sequence).
    time = t + d * (T - 1 - 2 * t)                  # fwd: t, bwd: T-1-t
    valid = len_ref[...] > time                     # (B, 1) bool
    h_next = jnp.where(valid, h_new, h)             # hidden frozen past each seq's length
    h_scr[...] = h_next
    out_ref[0, 0] = jnp.where(valid, h_new, jnp.zeros_like(h_new))   # padded outputs = 0

    @pl.when(t == T - 1)
    def _():
        hfin_ref[0] = h_next                        # final hidden of this direction


def _decoder_kernel(emb_ref, tgt_ref, len_ref, enc_ref, h0i_ref, h1i_ref,
                    wi0_ref, wh0_ref, b0_ref, wi1_ref, wh1_ref, b1_ref,
                    wc1_ref, wc2_ref, bc_ref, wo_ref, bo_ref,
                    logits_ref, loss_ref,
                    h0_scr, h1_scr, loss_scr):
    """Fused decoder step over grid=(T,): 2-layer GRU + Luong dot attention + concat/out
    head + masked cross-entropy accumulation.  All weights and enc outputs are resident."""
    t = pl.program_id(0)
    T = pl.num_programs(0)

    @pl.when(t == 0)
    def _():
        h0_scr[...] = h0i_ref[...]                  # decoder_hidden = encoder_hidden[:2]
        h1_scr[...] = h1i_ref[...]
        loss_scr[...] = jnp.zeros_like(loss_scr)

    # --- 2-layer unidirectional GRU (teacher-forced embedding pre-gathered in glue) ---
    x = emb_ref[0]                                  # (B, H)
    h0 = _gru_cell(x, h0_scr[...], wi0_ref[...], wh0_ref[...], b0_ref[...])
    h1 = _gru_cell(h0, h1_scr[...], wi1_ref[...], wh1_ref[...], b1_ref[...])
    h0_scr[...] = h0
    h1_scr[...] = h1

    # --- Luong 'dot' attention via MXU einsums (unmasked over T, matching the reference
    #     Attn module; padded encoder timesteps have zero outputs -> score 0) ---
    enc = enc_ref[...]                              # (B, T, H), VMEM-resident
    q = h1[:, None, :]                              # (B, 1, H)
    scores = jnp.einsum("bqh,bth->bqt", q, enc,
                        preferred_element_type=jnp.float32)            # (B, 1, T)
    m = jnp.max(scores, axis=-1, keepdims=True)
    e = jnp.exp(scores - m)
    attn = e * pl.reciprocal(jnp.sum(e, axis=-1, keepdims=True), approx=True)
    context = jnp.einsum("bqt,bth->bqh", attn, enc,
                         preferred_element_type=jnp.float32)[:, 0, :]  # (B, H)

    concat = jnp.tanh(_mm(h1, wc1_ref[...]) + _mm(context, wc2_ref[...]) + bc_ref[...])
    logits = _mm(concat, wo_ref[...]) + bo_ref[...]                    # (B, V) raw logits
    logits_ref[0] = logits

    # --- masked cross-entropy contribution of this timestep ---
    # TODO(synk): masked_cross_entropy is external to the provided source; the standard
    # log_softmax + target-gather + length-mask / sum(lengths) implementation is assumed.
    lm = jnp.max(logits, axis=-1, keepdims=True)
    lse = jnp.log(jnp.sum(jnp.exp(logits - lm), axis=-1, keepdims=True)) + lm
    logp = logits - lse
    tgt = tgt_ref[0]                                                   # (B, 1) int32
    onehot = jax.lax.broadcasted_iota(jnp.int32, logits.shape, 1) == tgt
    nll = -jnp.sum(jnp.where(onehot, logp, 0.0), axis=-1, keepdims=True)   # (B, 1)
    valid = (len_ref[...] > t).astype(jnp.float32)                         # (B, 1)
    loss_scr[...] = loss_scr[...] + jnp.sum(nll * valid)

    @pl.when(t == T - 1)
    def _():
        total = jnp.sum(len_ref[...]).astype(jnp.float32)
        loss_ref[...] = loss_scr[...] / total


# ----------------------------- kernel wrappers -----------------------------

def bigru_layer(x_seq, len_col, layer_params):
    """x_seq: (T, B, Din) -> (per-direction outputs (2, T, B, H), final hiddens (2, B, H))."""
    T, B, Din = x_seq.shape
    wi, wh, b = layer_params["wi"], layer_params["wh"], layer_params["b"]
    H = wh.shape[-1]

    def x_map(d, t):                      # actual time step: fwd t, bwd T-1-t
        return (t + d * (T - 1 - 2 * t), 0, 0)

    def out_map(d, t):
        return (d, t + d * (T - 1 - 2 * t), 0, 0)

    return pl.pallas_call(
        _bigru_layer_kernel,
        grid=(2, T),
        in_specs=[
            pl.BlockSpec((B, 1), lambda d, t: (0, 0)),                  # lengths (resident)
            pl.BlockSpec((1, B, Din), x_map),                           # x at actual time
            pl.BlockSpec((1, 3, Din, H), lambda d, t: (d, 0, 0, 0)),    # Wi (per-direction)
            pl.BlockSpec((1, 3, H, H), lambda d, t: (d, 0, 0, 0)),      # Wh (per-direction)
            pl.BlockSpec((1, 4, 1, H), lambda d, t: (d, 0, 0, 0)),      # biases (per-dir)
        ],
        out_specs=(
            pl.BlockSpec((1, 1, B, H), out_map),                        # outputs per step
            pl.BlockSpec((1, B, H), lambda d, t: (d, 0, 0)),            # final hidden
        ),
        out_shape=(
            jax.ShapeDtypeStruct((2, T, B, H), jnp.float32),
            jax.ShapeDtypeStruct((2, B, H), jnp.float32),
        ),
        scratch_shapes=[pltpu.VMEM((B, H), jnp.float32)],
        compiler_params=pltpu.CompilerParams(
            dimension_semantics=("parallel", "arbitrary")),
    )(len_col, x_seq, wi, wh, b)


def decoder_run(dec_emb, tgt_tb1, len_col, enc_bth, h0_init, h1_init, params):
    """dec_emb: (T, B, H); tgt_tb1: (T, B, 1) int32; enc_bth: (B, T, H).
    Returns (logits (T, B, V), loss (1, 1))."""
    T, B, H = dec_emb.shape
    V = params["bo"].shape[-1]

    def const_spec(shape):
        nd = len(shape)
        return pl.BlockSpec(shape, lambda t, _n=nd: (0,) * _n)

    d0, d1 = params["dec_gru"][0], params["dec_gru"][1]
    return pl.pallas_call(
        _decoder_kernel,
        grid=(T,),
        in_specs=[
            pl.BlockSpec((1, B, H), lambda t: (t, 0, 0)),       # teacher-forced embeddings
            pl.BlockSpec((1, B, 1), lambda t: (t, 0, 0)),       # CE targets
            const_spec((B, 1)),                                 # lengths
            const_spec((B, T, H)),                              # encoder outputs (resident)
            const_spec((B, H)), const_spec((B, H)),             # initial hidden (layer0/1)
            const_spec((3, H, H)), const_spec((3, H, H)), const_spec((4, 1, H)),   # GRU l0
            const_spec((3, H, H)), const_spec((3, H, H)), const_spec((4, 1, H)),   # GRU l1
            const_spec((H, H)), const_spec((H, H)), const_spec((1, H)),            # concat
            const_spec((H, V)), const_spec((1, V)),                                # out
        ],
        out_specs=(
            pl.BlockSpec((1, B, V), lambda t: (t, 0, 0)),       # logits written per step
            pl.BlockSpec((1, 1), lambda t: (0, 0)),             # loss (resident accumulator)
        ),
        out_shape=(
            jax.ShapeDtypeStruct((T, B, V), jnp.float32),
            jax.ShapeDtypeStruct((1, 1), jnp.float32),
        ),
        scratch_shapes=[pltpu.VMEM((B, H), jnp.float32),
                        pltpu.VMEM((B, H), jnp.float32),
                        pltpu.VMEM((1, 1), jnp.float32)],
        compiler_params=pltpu.CompilerParams(
            dimension_semantics=("arbitrary",)),
    )(dec_emb, tgt_tb1, len_col, enc_bth, h0_init, h1_init,
      d0["wi"], d0["wh"], d0["b"], d1["wi"], d1["wh"], d1["b"],
      params["wc1_t"], params["wc2_t"], params["bc"], params["wo_t"], params["bo"])


# ----------------------------- parameters -----------------------------

def init_params(key, vocab_size, hidden_size, num_tags):
    H = hidden_size
    k = 1.0 / math.sqrt(H)
    keys = iter(jax.random.split(key, 64))

    def u(shape, bound):
        return jax.random.uniform(next(keys), shape, jnp.float32, -bound, bound)

    def n(shape):
        return jax.random.normal(next(keys), shape, jnp.float32)

    def gru_dir(din):
        # PyTorch GRU layout: weight_ih (3H, Din), weight_hh (3H, H), gate order [r; z; n].
        wih = u((3 * H, din), k)
        whh = u((3 * H, H), k)
        bih = u((3 * H,), k)
        bhh = u((3 * H,), k)
        wi = jnp.stack([wih[g * H:(g + 1) * H, :].T for g in range(3)])   # (3, Din, H)
        wh = jnp.stack([whh[g * H:(g + 1) * H, :].T for g in range(3)])   # (3, H, H)
        b = jnp.stack([bih[0:H] + bhh[0:H],            # b_r  (combined)
                       bih[H:2 * H] + bhh[H:2 * H],    # b_z  (combined)
                       bih[2 * H:3 * H],               # b_in
                       bhh[2 * H:3 * H]])[:, None, :]  # b_hn  -> (4, 1, H)
        return dict(wi=wi, wh=wh, b=b)

    p = {}
    p["enc_embed"] = n((vocab_size, H))                # encoder nn.Embedding(vocab, H)
    enc_layers = []
    for layer in range(2):                             # 2-layer bidirectional GRU
        din = H if layer == 0 else 2 * H
        fwd, bwd = gru_dir(din), gru_dir(din)
        enc_layers.append(dict(
            wi=jnp.stack([fwd["wi"], bwd["wi"]]),      # (2, 3, Din, H)
            wh=jnp.stack([fwd["wh"], bwd["wh"]]),      # (2, 3, H, H)
            b=jnp.stack([fwd["b"], bwd["b"]])))        # (2, 4, 1, H)
    p["enc_gru"] = enc_layers

    p["dec_embed"] = n((num_tags, H))                  # decoder nn.Embedding(num_tags, H)
    p["dec_gru"] = [gru_dir(H), gru_dir(H)]            # 2-layer unidirectional GRU

    kc = 1.0 / math.sqrt(2 * H)
    wc = u((H, 2 * H), kc)                             # nn.Linear(2H, H)
    p["wc1_t"] = wc[:, :H].T                           # acts on rnn_output
    p["wc2_t"] = wc[:, H:].T                           # acts on context
    p["bc"] = u((H,), kc).reshape(1, -1)
    ko = 1.0 / math.sqrt(H)
    p["wo_t"] = u((num_tags, H), ko).T                 # nn.Linear(H, num_tags)
    p["bo"] = u((num_tags,), ko).reshape(1, -1)
    # NOTE: self.word_embed from the PyTorch module is never used in forward() -> omitted.
    return p


# ----------------------------- forward pass -----------------------------

def seq2seq_forward(params, input_ids, tag_ids, lengths, o_token_id):
    """input_ids, tag_ids: (B, T) int32; lengths: (B,) int32.
    Returns (outputs (B, T, num_tags) raw logits, scalar loss)."""
    B, T = input_ids.shape
    H = params["enc_embed"].shape[1]
    len_col = lengths.astype(jnp.int32).reshape(B, 1)

    input_tb = input_ids.T                               # (T, B)  (torch.transpose)
    tag_tb = tag_ids.astype(jnp.int32).T                 # (T, B)

    # ---- encoder: 2-layer bidirectional GRU, one fused pallas_call per layer ----
    x = jnp.take(params["enc_embed"], input_tb, axis=0)  # (T, B, H)
    enc_hidden = []
    for layer in range(2):
        out2, hfin = bigru_layer(x, len_col, params["enc_gru"][layer])
        x = jnp.concatenate([out2[0], out2[1]], axis=-1)  # (T, B, 2H) -> next layer input
        enc_hidden.extend([hfin[0], hfin[1]])             # [l0f, l0b, l1f, l1b]
    encoder_outputs = x[:, :, :H] + x[:, :, H:]           # sum fwd + bwd, (T, B, H)
    enc_bth = jnp.transpose(encoder_outputs, (1, 0, 2))   # (B, T, H) for the fused decoder

    # ---- decoder: teacher forcing with tag[t-1] (O token at t=0), fully fused ----
    dec_in = jnp.concatenate(
        [jnp.full((1, B), o_token_id, jnp.int32), tag_tb[:-1]], axis=0)   # (T, B)
    dec_emb = jnp.take(params["dec_embed"], dec_in, axis=0)               # (T, B, H)
    tgt_tb1 = tag_tb[:, :, None]                                          # (T, B, 1)

    logits_tbv, loss = decoder_run(dec_emb, tgt_tb1, len_col, enc_bth,
                                   enc_hidden[0], enc_hidden[1], params)
    outputs_btv = jnp.transpose(logits_tbv, (1, 0, 2))    # (B, T, num_tags) raw logits
    return outputs_btv, loss[0, 0]


# ----------------------------- demo -----------------------------

if __name__ == "__main__":
    key = jax.random.PRNGKey(0)
    vocab_size, hidden_size, num_tags = 100, 32, 16
    tag_pad_idx, o_token_id = 0, 1
    B, T = 2, 8

    pkey, ikey, tkey = jax.random.split(key, 3)
    params = init_params(pkey, vocab_size, hidden_size, num_tags)

    lengths = jnp.array([8, 6], jnp.int32)
    input_ids = jax.random.randint(ikey, (B, T), 1, vocab_size, jnp.int32)
    tag_ids = jax.random.randint(tkey, (B, T), 1, num_tags, jnp.int32)
    pos = jnp.arange(T)[None, :]
    valid = pos < lengths[:, None]
    input_ids = jnp.where(valid, input_ids, 0)
    tag_ids = jnp.where(valid, tag_ids, tag_pad_idx)

    fwd = jax.jit(functools.partial(seq2seq_forward, o_token_id=o_token_id))
    outputs, loss = fwd(params, input_ids, tag_ids, lengths)
    jax.block_until_ready((outputs, loss))

    assert outputs.shape == (B, T, num_tags)
    assert loss.shape == ()
    assert bool(jnp.isfinite(loss))
    print("KERNEL_OK")
</pallas_src>

<mosaic_0001>
module attributes {stable_mosaic.version = 11 : i64} {
  func.func @_bigru_layer_kernel(%arg0: i32, %arg1: i32, %arg2: memref<2x1xi32, #tpu.memory_space<vmem>>, %arg3: memref<1x2x32xf32, #tpu.memory_space<vmem>>, %arg4: memref<1x3x32x32xf32, #tpu.memory_space<vmem>>, %arg5: memref<1x3x32x32xf32, #tpu.memory_space<vmem>>, %arg6: memref<1x4x1x32xf32, #tpu.memory_space<vmem>>, %arg7: memref<1x1x2x32xf32, #tpu.memory_space<vmem>>, %arg8: memref<1x2x32xf32, #tpu.memory_space<vmem>>, %arg9: memref<2x32xf32, #tpu.memory_space<vmem>>) attributes {dimension_semantics = [#tpu.dimension_semantics<parallel>, #tpu.dimension_semantics<arbitrary>], iteration_bounds = array<i64: 2, 8>, scalar_prefetch = 0 : i64, scratch_operands = 1 : i64, tpu.core_type = #tpu.core_type<tc>, window_params = [{pipeline_mode = #tpu.pipeline_mode<synchronous>, transform_indices = @transform_0, window_bounds = array<i64: 2, 1>}, {transform_indices = @transform_1, window_bounds = array<i64: 1, 2, 32>}, {transform_indices = @transform_2, window_bounds = array<i64: 1, 3, 32, 32>}, {transform_indices = @transform_3, window_bounds = array<i64: 1, 3, 32, 32>}, {transform_indices = @transform_4, window_bounds = array<i64: 1, 4, 1, 32>}, {transform_indices = @transform_5, window_bounds = array<i64: 1, 1, 2, 32>}, {transform_indices = @transform_6, window_bounds = array<i64: 1, 2, 32>}]} {
    %c0_i32 = arith.constant 0 : i32
    %0 = arith.cmpi eq, %arg1, %c0_i32 : i32
    %1 = arith.extui %0 : i1 to i32
    %c0_i32_0 = arith.constant 0 : i32
    %2 = arith.cmpi ne, %1, %c0_i32_0 : i32
    scf.if %2 {
      %cst_36 = arith.constant 0.000000e+00 : f32
      %87 = vector.broadcast %cst_36 : f32 to vector<2x32xf32>
      %c0_37 = arith.constant 0 : index
      %c0_38 = arith.constant 0 : index
      %88 = vector.load %arg9[%c0_37, %c0_38] : memref<2x32xf32, #tpu.memory_space<vmem>>, vector<2x32xf32>
      tpu.vector_store %arg9[%c0_37, %c0_38], %87 {strides = array<i32>} : memref<2x32xf32, #tpu.memory_space<vmem>>, vector<2x32xf32>,
    } else {
    }
    %c0 = arith.constant 0 : index
    %c0_1 = arith.constant 0 : index
    %3 = vector.load %arg9[%c0, %c0_1] : memref<2x32xf32, #tpu.memory_space<vmem>>, vector<2x32xf32>
    %c0_2 = arith.constant 0 : index
    %c0_3 = arith.constant 0 : index
    %c0_4 = arith.constant 0 : index
    %4 = vector.load %arg3[%c0_2, %c0_3, %c0_4] : memref<1x2x32xf32, #tpu.memory_space<vmem>>, vector<1x2x32xf32>
    %5 = vector.shape_cast %4 : vector<1x2x32xf32> to vector<2x32xf32>
    %c0_5 = arith.constant 0 : index
    %c0_6 = arith.constant 0 : index
    %c0_7 = arith.constant 0 : index
    %c0_8 = arith.constant 0 : index
    %6 = vector.load %arg4[%c0_5, %c0_6, %c0_7, %c0_8] : memref<1x3x32x32xf32, #tpu.memory_space<vmem>>, vector<1x3x32x32xf32>
    %7 = vector.shape_cast %6 : vector<1x3x32x32xf32> to vector<3x32x32xf32>
    %c0_9 = arith.constant 0 : index
    %c0_10 = arith.constant 0 : index
    %c0_11 = arith.constant 0 : index
    %c0_12 = arith.constant 0 : index
    %8 = vector.load %arg5[%c0_9, %c0_10, %c0_11, %c0_12] : memref<1x3x32x32xf32, #tpu.memory_space<vmem>>, vector<1x3x32x32xf32>
    %9 = vector.shape_cast %8 : vector<1x3x32x32xf32> to vector<3x32x32xf32>
    %c0_13 = arith.constant 0 : index
    %c0_14 = arith.constant 0 : index
    %c0_15 = arith.constant 0 : index
    %c0_16 = arith.constant 0 : index
    %10 = vector.load %arg6[%c0_13, %c0_14, %c0_15, %c0_16] : memref<1x4x1x32xf32, #tpu.memory_space<vmem>>, vector<1x4x1x32xf32>
    %11 = vector.shape_cast %10 : vector<1x4x1x32xf32> to vector<4x1x32xf32>
    %12 = vector.extract_strided_slice %7 {offsets = [0, 0, 0], sizes = [1, 32, 32], strides = [1, 1, 1]} : vector<3x32x32xf32> to vector<1x32x32xf32>
    %13 = vector.shape_cast %12 : vector<1x32x32xf32> to vector<32x32xf32>
    %cst = arith.constant dense<0.000000e+00> : vector<2x32xf32>
    %14 = tpu.matmul %5, %13, %cst {dimension_numbers = #tpu.dot_dimension_numbers<[1], [0], [0], [1], [0, 0, 1, 1], [], []>} : vector<2x32xf32>, vector<32x32xf32>, vector<2x32xf32> -> vector<2x32xf32>
    %15 = vector.extract_strided_slice %9 {offsets = [0, 0, 0], sizes = [1, 32, 32], strides = [1, 1, 1]} : vector<3x32x32xf32> to vector<1x32x32xf32>
    %16 = vector.shape_cast %15 : vector<1x32x32xf32> to vector<32x32xf32>
    %cst_17 = arith.constant dense<0.000000e+00> : vector<2x32xf32>
    %17 = tpu.matmul %3, %16, %cst_17 {dimension_numbers = #tpu.dot_dimension_numbers<[1], [0], [0], [1], [0, 0, 1, 1], [], []>} : vector<2x32xf32>, vector<32x32xf32>, vector<2x32xf32> -> vector<2x32xf32>
    %18 = arith.addf %14, %17 : vector<2x32xf32>
    %19 = vector.extract_strided_slice %11 {offsets = [0, 0, 0], sizes = [1, 1, 32], strides = [1, 1, 1]} : vector<4x1x32xf32> to vector<1x1x32xf32>
    %20 = vector.shape_cast %19 : vector<1x1x32xf32> to vector<1x32xf32>
    %21 = vector.broadcast %20 : vector<1x32xf32> to vector<2x32xf32>
    %22 = arith.addf %18, %21 : vector<2x32xf32>
    %23 = arith.negf %22 : vector<2x32xf32>
    %24 = math.exp %23 : vector<2x32xf32>
    %cst_18 = arith.constant 1.000000e+00 : f32
    %25 = vector.broadcast %cst_18 : f32 to vector<2x32xf32>
    %26 = arith.addf %25, %24 : vector<2x32xf32>
    %27 = arith.divf %25, %26 : vector<2x32xf32>
    %28 = vector.extract_strided_slice %7 {offsets = [1, 0, 0], sizes = [1, 32, 32], strides = [1, 1, 1]} : vector<3x32x32xf32> to vector<1x32x32xf32>
    %29 = vector.shape_cast %28 : vector<1x32x32xf32> to vector<32x32xf32>
    %cst_19 = arith.constant dense<0.000000e+00> : vector<2x32xf32>
    %30 = tpu.matmul %5, %29, %cst_19 {dimension_numbers = #tpu.dot_dimension_numbers<[1], [0], [0], [1], [0, 0, 1, 1], [], []>} : vector<2x32xf32>, vector<32x32xf32>, vector<2x32xf32> -> vector<2x32xf32>
    %31 = vector.extract_strided_slice %9 {offsets = [1, 0, 0], sizes = [1, 32, 32], strides = [1, 1, 1]} : vector<3x32x32xf32> to vector<1x32x32xf32>
    %32 = vector.shape_cast %31 : vector<1x32x32xf32> to vector<32x32xf32>
    %cst_20 = arith.constant dense<0.000000e+00> : vector<2x32xf32>
    %33 = tpu.matmul %3, %32, %cst_20 {dimension_numbers = #tpu.dot_dimension_numbers<[1], [0], [0], [1], [0, 0, 1, 1], [], []>} : vector<2x32xf32>, vector<32x32xf32>, vector<2x32xf32> -> vector<2x32xf32>
    %34 = arith.addf %30, %33 : vector<2x32xf32>
    %35 = vector.extract_strided_slice %11 {offsets = [1, 0, 0], sizes = [1, 1, 32], strides = [1, 1, 1]} : vector<4x1x32xf32> to vector<1x1x32xf32>
    %36 = vector.shape_cast %35 : vector<1x1x32xf32> to vector<1x32xf32>
    %37 = vector.broadcast %36 : vector<1x32xf32> to vector<2x32xf32>
    %38 = arith.addf %34, %37 : vector<2x32xf32>
    %39 = arith.negf %38 : vector<2x32xf32>
    %40 = math.exp %39 : vector<2x32xf32>
    %cst_21 = arith.constant 1.000000e+00 : f32
    %41 = vector.broadcast %cst_21 : f32 to vector<2x32xf32>
    %42 = arith.addf %41, %40 : vector<2x32xf32>
    %43 = arith.divf %41, %42 : vector<2x32xf32>
    %44 = vector.extract_strided_slice %7 {offsets = [2, 0, 0], sizes = [1, 32, 32], strides = [1, 1, 1]} : vector<3x32x32xf32> to vector<1x32x32xf32>
    %45 = vector.shape_cast %44 : vector<1x32x32xf32> to vector<32x32xf32>
    %cst_22 = arith.constant dense<0.000000e+00> : vector<2x32xf32>
    %46 = tpu.matmul %5, %45, %cst_22 {dimension_numbers = #tpu.dot_dimension_numbers<[1], [0], [0], [1], [0, 0, 1, 1], [], []>} : vector<2x32xf32>, vector<32x32xf32>, vector<2x32xf32> -> vector<2x32xf32>
    %47 = vector.extract_strided_slice %11 {offsets = [2, 0, 0], sizes = [1, 1, 32], strides = [1, 1, 1]} : vector<4x1x32xf32> to vector<1x1x32xf32>
    %48 = vector.shape_cast %47 : vector<1x1x32xf32> to vector<1x32xf32>
    %49 = vector.broadcast %48 : vector<1x32xf32> to vector<2x32xf32>
    %50 = arith.addf %46, %49 : vector<2x32xf32>
    %51 = vector.extract_strided_slice %9 {offsets = [2, 0, 0], sizes = [1, 32, 32], strides = [1, 1, 1]} : vector<3x32x32xf32> to vector<1x32x32xf32>
    %52 = vector.shape_cast %51 : vector<1x32x32xf32> to vector<32x32xf32>
    %cst_23 = arith.constant dense<0.000000e+00> : vector<2x32xf32>
    %53 = tpu.matmul %3, %52, %cst_23 {dimension_numbers = #tpu.dot_dimension_numbers<[1], [0], [0], [1], [0, 0, 1, 1], [], []>} : vector<2x32xf32>, vector<32x32xf32>, vector<2x32xf32> -> vector<2x32xf32>
    %54 = vector.extract_strided_slice %11 {offsets = [3, 0, 0], sizes = [1, 1, 32], strides = [1, 1, 1]} : vector<4x1x32xf32> to vector<1x1x32xf32>
    %55 = vector.shape_cast %54 : vector<1x1x32xf32> to vector<1x32xf32>
    %56 = vector.broadcast %55 : vector<1x32xf32> to vector<2x32xf32>
    %57 = arith.addf %53, %56 : vector<2x32xf32>
    %58 = arith.mulf %27, %57 : vector<2x32xf32>
    %59 = arith.addf %50, %58 : vector<2x32xf32>
    %60 = math.tanh %59 : vector<2x32xf32>
    %cst_24 = arith.constant 1.000000e+00 : f32
    %61 = vector.broadcast %cst_24 : f32 to vector<2x32xf32>
    %62 = arith.subf %61, %43 : vector<2x32xf32>
    %63 = arith.mulf %62, %60 : vector<2x32xf32>
    %64 = arith.mulf %43, %3 : vector<2x32xf32>
    %65 = arith.addf %63, %64 : vector<2x32xf32>
    %c2_i32 = arith.constant 2 : i32
    %66 = arith.muli %c2_i32, %arg1 : i32
    %c7_i32 = arith.constant 7 : i32
    %67 = arith.subi %c7_i32, %66 : i32
    %68 = arith.muli %arg0, %67 : i32
    %69 = arith.addi %arg1, %68 : i32
    %c0_25 = arith.constant 0 : index
    %c0_26 = arith.constant 0 : index
    %70 = vector.load %arg2[%c0_25, %c0_26] : memref<2x1xi32, #tpu.memory_space<vmem>>, vector<2x1xi32>
    %71 = vector.broadcast %69 : i32 to vector<2x1xi32>
    %72 = arith.cmpi sgt, %70, %71 : vector<2x1xi32>
    %73 = vector.shape_cast %72 : vector<2x1xi1> to vector<2x1xi1>
    %74 = vector.broadcast %73 : vector<2x1xi1> to vector<2x32xi1>
    %75 = arith.select %74, %65, %3 : vector<2x32xi1>, vector<2x32xf32>
    %c0_27 = arith.constant 0 : index
    %c0_28 = arith.constant 0 : index
    %76 = vector.load %arg9[%c0_27, %c0_28] : memref<2x32xf32, #tpu.memory_space<vmem>>, vector<2x32xf32>
    tpu.vector_store %arg9[%c0_27, %c0_28], %75 {strides = array<i32>} : memref<2x32xf32, #tpu.memory_space<vmem>>, vector<2x32xf32>,
    %cst_29 = arith.constant 0.000000e+00 : f32
    %77 = vector.broadcast %cst_29 : f32 to vector<2x32xf32>
    %78 = vector.shape_cast %72 : vector<2x1xi1> to vector<2x1xi1>
    %79 = vector.broadcast %78 : vector<2x1xi1> to vector<2x32xi1>
    %80 = arith.select %79, %65, %77 : vector<2x32xi1>, vector<2x32xf32>
    %c0_30 = arith.constant 0 : index
    %c0_31 = arith.constant 0 : index
    %c0_32 = arith.constant 0 : index
    %c0_33 = arith.constant 0 : index
    %81 = vector.load %arg7[%c0_30, %c0_31, %c0_32, %c0_33] : memref<1x1x2x32xf32, #tpu.memory_space<vmem>>, vector<1x1x2x32xf32>
    %82 = vector.shape_cast %81 : vector<1x1x2x32xf32> to vector<2x32xf32>
    %83 = vector.shape_cast %80 : vector<2x32xf32> to vector<1x1x2x32xf32>
    tpu.vector_store %arg7[%c0_30, %c0_31, %c0_32, %c0_33], %83 {strides = array<i32>} : memref<1x1x2x32xf32, #tpu.memory_space<vmem>>, vector<1x1x2x32xf32>,
    %c7_i32_34 = arith.constant 7 : i32
    %84 = arith.cmpi eq, %arg1, %c7_i32_34 : i32
    %85 = arith.extui %84 : i1 to i32
    %c0_i32_35 = arith.constant 0 : i32
    %86 = arith.cmpi ne, %85, %c0_i32_35 : i32
    scf.if %86 {
      %c0_36 = arith.constant 0 : index
      %c0_37 = arith.constant 0 : index
      %c0_38 = arith.constant 0 : index
      %87 = vector.load %arg8[%c0_36, %c0_37, %c0_38] : memref<1x2x32xf32, #tpu.memory_space<vmem>>, vector<1x2x32xf32>
      %88 = vector.shape_cast %87 : vector<1x2x32xf32> to vector<2x32xf32>
      %89 = vector.shape_cast %75 : vector<2x32xf32> to vector<1x2x32xf32>
      tpu.vector_store %arg8[%c0_36, %c0_37, %c0_38], %89 {strides = array<i32>} : memref<1x2x32xf32, #tpu.memory_space<vmem>>, vector<1x2x32xf32>,
    } else {
    }
    return
  }
  func.func @transform_0(%arg0: i32, %arg1: i32) -> (i32, i32) {
    %c0_i32 = arith.constant 0 : i32
    %c0_i32_0 = arith.constant 0 : i32
    %c0_i32_1 = arith.constant 0 : i32
    return %c0_i32, %c0_i32_0 : i32, i32
  }
  func.func @transform_1(%arg0: i32, %arg1: i32) -> (i32, i32, i32) {
    %c2_i32 = arith.constant 2 : i32
    %0 = arith.muli %c2_i32, %arg1 : i32
    %c7_i32 = arith.constant 7 : i32
    %1 = arith.subi %c7_i32, %0 : i32
    %2 = arith.muli %arg0, %1 : i32
    %3 = arith.addi %arg1, %2 : i32
    %c0_i32 = arith.constant 0 : i32
    %c0_i32_0 = arith.constant 0 : i32
    %c0_i32_1 = arith.constant 0 : i32
    return %3, %c0_i32, %c0_i32_0 : i32, i32, i32
  }
  func.func @transform_2(%arg0: i32, %arg1: i32) -> (i32, i32, i32, i32) {
    %c0_i32 = arith.constant 0 : i32
    %c0_i32_0 = arith.constant 0 : i32
    %c0_i32_1 = arith.constant 0 : i32
    %c0_i32_2 = arith.constant 0 : i32
    return %arg0, %c0_i32, %c0_i32_0, %c0_i32_1 : i32, i32, i32, i32
  }
  func.func @transform_3(%arg0: i32, %arg1: i32) -> (i32, i32, i32, i32) {
    %c0_i32 = arith.constant 0 : i32
    %c0_i32_0 = arith.constant 0 : i32
    %c0_i32_1 = arith.constant 0 : i32
    %c0_i32_2 = arith.constant 0 : i32
    return %arg0, %c0_i32, %c0_i32_0, %c0_i32_1 : i32, i32, i32, i32
  }
  func.func @transform_4(%arg0: i32, %arg1: i32) -> (i32, i32, i32, i32) {
    %c0_i32 = arith.constant 0 : i32
    %c0_i32_0 = arith.constant 0 : i32
    %c0_i32_1 = arith.constant 0 : i32
    %c0_i32_2 = arith.constant 0 : i32
    return %arg0, %c0_i32, %c0_i32_0, %c0_i32_1 : i32, i32, i32, i32
  }
  func.func @transform_5(%arg0: i32, %arg1: i32) -> (i32, i32, i32, i32) {
    %c2_i32 = arith.constant 2 : i32
    %0 = arith.muli %c2_i32, %arg1 : i32
    %c7_i32 = arith.constant 7 : i32
    %1 = arith.subi %c7_i32, %0 : i32
    %2 = arith.muli %arg0, %1 : i32
    %3 = arith.addi %arg1, %2 : i32
    %c0_i32 = arith.constant 0 : i32
    %c0_i32_0 = arith.constant 0 : i32
    %c0_i32_1 = arith.constant 0 : i32
    return %arg0, %3, %c0_i32, %c0_i32_0 : i32, i32, i32, i32
  }
  func.func @transform_6(%arg0: i32, %arg1: i32) -> (i32, i32, i32) {
    %c0_i32 = arith.constant 0 : i32
    %c0_i32_0 = arith.constant 0 : i32
    %c0_i32_1 = arith.constant 0 : i32
    return %arg0, %c0_i32, %c0_i32_0 : i32, i32, i32
  }
}

module attributes {stable_mosaic.version = 11 : i64} {
  func.func @_bigru_layer_kernel(%arg0: i32, %arg1: i32, %arg2: memref<2x1xi32, #tpu.memory_space<vmem>>, %arg3: memref<1x2x64xf32, #tpu.memory_space<vmem>>, %arg4: memref<1x3x64x32xf32, #tpu.memory_space<vmem>>, %arg5: memref<1x3x32x32xf32, #tpu.memory_space<vmem>>, %arg6: memref<1x4x1x32xf32, #tpu.memory_space<vmem>>, %arg7: memref<1x1x2x32xf32, #tpu.memory_space<vmem>>, %arg8: memref<1x2x32xf32, #tpu.memory_space<vmem>>, %arg9: memref<2x32xf32, #tpu.memory_space<vmem>>) attributes {dimension_semantics = [#tpu.dimension_semantics<parallel>, #tpu.dimension_semantics<arbitrary>], iteration_bounds = array<i64: 2, 8>, scalar_prefetch = 0 : i64, scratch_operands = 1 : i64, tpu.core_type = #tpu.core_type<tc>, window_params = [{pipeline_mode = #tpu.pipeline_mode<synchronous>, transform_indices = @transform_0, window_bounds = array<i64: 2, 1>}, {transform_indices = @transform_1, window_bounds = array<i64: 1, 2, 64>}, {transform_indices = @transform_2, window_bounds = array<i64: 1, 3, 64, 32>}, {transform_indices = @transform_3, window_bounds = array<i64: 1, 3, 32, 32>}, {transform_indices = @transform_4, window_bounds = array<i64: 1, 4, 1, 32>}, {transform_indices = @transform_5, window_bounds = array<i64: 1, 1, 2, 32>}, {transform_indices = @transform_6, window_bounds = array<i64: 1, 2, 32>}]} {
    %c0_i32 = arith.constant 0 : i32
    %0 = arith.cmpi eq, %arg1, %c0_i32 : i32
    %1 = arith.extui %0 : i1 to i32
    %c0_i32_0 = arith.constant 0 : i32
    %2 = arith.cmpi ne, %1, %c0_i32_0 : i32
    scf.if %2 {
      %cst_36 = arith.constant 0.000000e+00 : f32
      %87 = vector.broadcast %cst_36 : f32 to vector<2x32xf32>
      %c0_37 = arith.constant 0 : index
      %c0_38 = arith.constant 0 : index
      %88 = vector.load %arg9[%c0_37, %c0_38] : memref<2x32xf32, #tpu.memory_space<vmem>>, vector<2x32xf32>
      tpu.vector_store %arg9[%c0_37, %c0_38], %87 {strides = array<i32>} : memref<2x32xf32, #tpu.memory_space<vmem>>, vector<2x32xf32>,
    } else {
    }
    %c0 = arith.constant 0 : index
    %c0_1 = arith.constant 0 : index
    %3 = vector.load %arg9[%c0, %c0_1] : memref<2x32xf32, #tpu.memory_space<vmem>>, vector<2x32xf32>
    %c0_2 = arith.constant 0 : index
    %c0_3 = arith.constant 0 : index
    %c0_4 = arith.constant 0 : index
    %4 = vector.load %arg3[%c0_2, %c0_3, %c0_4] : memref<1x2x64xf32, #tpu.memory_space<vmem>>, vector<1x2x64xf32>
    %5 = vector.shape_cast %4 : vector<1x2x64xf32> to vector<2x64xf32>
    %c0_5 = arith.constant 0 : index
    %c0_6 = arith.constant 0 : index
    %c0_7 = arith.constant 0 : index
    %c0_8 = arith.constant 0 : index
    %6 = vector.load %arg4[%c0_5, %c0_6, %c0_7, %c0_8] : memref<1x3x64x32xf32, #tpu.memory_space<vmem>>, vector<1x3x64x32xf32>
    %7 = vector.shape_cast %6 : vector<1x3x64x32xf32> to vector<3x64x32xf32>
    %c0_9 = arith.constant 0 : index
    %c0_10 = arith.constant 0 : index
    %c0_11 = arith.constant 0 : index
    %c0_12 = arith.constant 0 : index
    %8 = vector.load %arg5[%c0_9, %c0_10, %c0_11, %c0_12] : memref<1x3x32x32xf32, #tpu.memory_space<vmem>>, vector<1x3x32x32xf32>
    %9 = vector.shape_cast %8 : vector<1x3x32x32xf32> to vector<3x32x32xf32>
    %c0_13 = arith.constant 0 : index
    %c0_14 = arith.constant 0 : index
    %c0_15 = arith.constant 0 : index
    %c0_16 = arith.constant 0 : index
    %10 = vector.load %arg6[%c0_13, %c0_14, %c0_15, %c0_16] : memref<1x4x1x32xf32, #tpu.memory_space<vmem>>, vector<1x4x1x32xf32>
    %11 = vector.shape_cast %10 : vector<1x4x1x32xf32> to vector<4x1x32xf32>
    %12 = vector.extract_strided_slice %7 {offsets = [0, 0, 0], sizes = [1, 64, 32], strides = [1, 1, 1]} : vector<3x64x32xf32> to vector<1x64x32xf32>
    %13 = vector.shape_cast %12 : vector<1x64x32xf32> to vector<64x32xf32>
    %cst = arith.constant dense<0.000000e+00> : vector<2x32xf32>
    %14 = tpu.matmul %5, %13, %cst {dimension_numbers = #tpu.dot_dimension_numbers<[1], [0], [0], [1], [0, 0, 1, 1], [], []>} : vector<2x64xf32>, vector<64x32xf32>, vector<2x32xf32> -> vector<2x32xf32>
    %15 = vector.extract_strided_slice %9 {offsets = [0, 0, 0], sizes = [1, 32, 32], strides = [1, 1, 1]} : vector<3x32x32xf32> to vector<1x32x32xf32>
    %16 = vector.shape_cast %15 : vector<1x32x32xf32> to vector<32x32xf32>
    %cst_17 = arith.constant dense<0.000000e+00> : vector<2x32xf32>
    %17 = tpu.matmul %3, %16, %cst_17 {dimension_numbers = #tpu.dot_dimension_numbers<[1], [0], [0], [1], [0, 0, 1, 1], [], []>} : vector<2x32xf32>, vector<32x32xf32>, vector<2x32xf32> -> vector<2x32xf32>
    %18 = arith.addf %14, %17 : vector<2x32xf32>
    %19 = vector.extract_strided_slice %11 {offsets = [0, 0, 0], sizes = [1, 1, 32], strides = [1, 1, 1]} : vector<4x1x32xf32> to vector<1x1x32xf32>
    %20 = vector.shape_cast %19 : vector<1x1x32xf32> to vector<1x32xf32>
    %21 = vector.broadcast %20 : vector<1x32xf32> to vector<2x32xf32>
    %22 = arith.addf %18, %21 : vector<2x32xf32>
    %23 = arith.negf %22 : vector<2x32xf32>
    %24 = math.exp %23 : vector<2x32xf32>
    %cst_18 = arith.constant 1.000000e+00 : f32
    %25 = vector.broadcast %cst_18 : f32 to vector<2x32xf32>
    %26 = arith.addf %25, %24 : vector<2x32xf32>
    %27 = arith.divf %25, %26 : vector<2x32xf32>
    %28 = vector.extract_strided_slice %7 {offsets = [1, 0, 0], sizes = [1, 64, 32], strides = [1, 1, 1]} : vector<3x64x32xf32> to vector<1x64x32xf32>
    %29 = vector.shape_cast %28 : vector<1x64x32xf32> to vector<64x32xf32>
    %cst_19 = arith.constant dense<0.000000e+00> : vector<2x32xf32>
    %30 = tpu.matmul %5, %29, %cst_19 {dimension_numbers = #tpu.dot_dimension_numbers<[1], [0], [0], [1], [0, 0, 1, 1], [], []>} : vector<2x64xf32>, vector<64x32xf32>, vector<2x32xf32> -> vector<2x32xf32>
    %31 = vector.extract_strided_slice %9 {offsets = [1, 0, 0], sizes = [1, 32, 32], strides = [1, 1, 1]} : vector<3x32x32xf32> to vector<1x32x32xf32>
    %32 = vector.shape_cast %31 : vector<1x32x32xf32> to vector<32x32xf32>
    %cst_20 = arith.constant dense<0.000000e+00> : vector<2x32xf32>
    %33 = tpu.matmul %3, %32, %cst_20 {dimension_numbers = #tpu.dot_dimension_numbers<[1], [0], [0], [1], [0, 0, 1, 1], [], []>} : vector<2x32xf32>, vector<32x32xf32>, vector<2x32xf32> -> vector<2x32xf32>
    %34 = arith.addf %30, %33 : vector<2x32xf32>
    %35 = vector.extract_strided_slice %11 {offsets = [1, 0, 0], sizes = [1, 1, 32], strides = [1, 1, 1]} : vector<4x1x32xf32> to vector<1x1x32xf32>
    %36 = vector.shape_cast %35 : vector<1x1x32xf32> to vector<1x32xf32>
    %37 = vector.broadcast %36 : vector<1x32xf32> to vector<2x32xf32>
    %38 = arith.addf %34, %37 : vector<2x32xf32>
    %39 = arith.negf %38 : vector<2x32xf32>
    %40 = math.exp %39 : vector<2x32xf32>
    %cst_21 = arith.constant 1.000000e+00 : f32
    %41 = vector.broadcast %cst_21 : f32 to vector<2x32xf32>
    %42 = arith.addf %41, %40 : vector<2x32xf32>
    %43 = arith.divf %41, %42 : vector<2x32xf32>
    %44 = vector.extract_strided_slice %7 {offsets = [2, 0, 0], sizes = [1, 64, 32], strides = [1, 1, 1]} : vector<3x64x32xf32> to vector<1x64x32xf32>
    %45 = vector.shape_cast %44 : vector<1x64x32xf32> to vector<64x32xf32>
    %cst_22 = arith.constant dense<0.000000e+00> : vector<2x32xf32>
    %46 = tpu.matmul %5, %45, %cst_22 {dimension_numbers = #tpu.dot_dimension_numbers<[1], [0], [0], [1], [0, 0, 1, 1], [], []>} : vector<2x64xf32>, vector<64x32xf32>, vector<2x32xf32> -> vector<2x32xf32>
    %47 = vector.extract_strided_slice %11 {offsets = [2, 0, 0], sizes = [1, 1, 32], strides = [1, 1, 1]} : vector<4x1x32xf32> to vector<1x1x32xf32>
    %48 = vector.shape_cast %47 : vector<1x1x32xf32> to vector<1x32xf32>
    %49 = vector.broadcast %48 : vector<1x32xf32> to vector<2x32xf32>
    %50 = arith.addf %46, %49 : vector<2x32xf32>
    %51 = vector.extract_strided_slice %9 {offsets = [2, 0, 0], sizes = [1, 32, 32], strides = [1, 1, 1]} : vector<3x32x32xf32> to vector<1x32x32xf32>
    %52 = vector.shape_cast %51 : vector<1x32x32xf32> to vector<32x32xf32>
    %cst_23 = arith.constant dense<0.000000e+00> : vector<2x32xf32>
    %53 = tpu.matmul %3, %52, %cst_23 {dimension_numbers = #tpu.dot_dimension_numbers<[1], [0], [0], [1], [0, 0, 1, 1], [], []>} : vector<2x32xf32>, vector<32x32xf32>, vector<2x32xf32> -> vector<2x32xf32>
    %54 = vector.extract_strided_slice %11 {offsets = [3, 0, 0], sizes = [1, 1, 32], strides = [1, 1, 1]} : vector<4x1x32xf32> to vector<1x1x32xf32>
    %55 = vector.shape_cast %54 : vector<1x1x32xf32> to vector<1x32xf32>
    %56 = vector.broadcast %55 : vector<1x32xf32> to vector<2x32xf32>
    %57 = arith.addf %53, %56 : vector<2x32xf32>
    %58 = arith.mulf %27, %57 : vector<2x32xf32>
    %59 = arith.addf %50, %58 : vector<2x32xf32>
    %60 = math.tanh %59 : vector<2x32xf32>
    %cst_24 = arith.constant 1.000000e+00 : f32
    %61 = vector.broadcast %cst_24 : f32 to vector<2x32xf32>
    %62 = arith.subf %61, %43 : vector<2x32xf32>
    %63 = arith.mulf %62, %60 : vector<2x32xf32>
    %64 = arith.mulf %43, %3 : vector<2x32xf32>
    %65 = arith.addf %63, %64 : vector<2x32xf32>
    %c2_i32 = arith.constant 2 : i32
    %66 = arith.muli %c2_i32, %arg1 : i32
    %c7_i32 = arith.constant 7 : i32
    %67 = arith.subi %c7_i32, %66 : i32
    %68 = arith.muli %arg0, %67 : i32
    %69 = arith.addi %arg1, %68 : i32
    %c0_25 = arith.constant 0 : index
    %c0_26 = arith.constant 0 : index
    %70 = vector.load %arg2[%c0_25, %c0_26] : memref<2x1xi32, #tpu.memory_space<vmem>>, vector<2x1xi32>
    %71 = vector.broadcast %69 : i32 to vector<2x1xi32>
    %72 = arith.cmpi sgt, %70, %71 : vector<2x1xi32>
    %73 = vector.shape_cast %72 : vector<2x1xi1> to vector<2x1xi1>
    %74 = vector.broadcast %73 : vector<2x1xi1> to vector<2x32xi1>
    %75 = arith.select %74, %65, %3 : vector<2x32xi1>, vector<2x32xf32>
    %c0_27 = arith.constant 0 : index
    %c0_28 = arith.constant 0 : index
    %76 = vector.load %arg9[%c0_27, %c0_28] : memref<2x32xf32, #tpu.memory_space<vmem>>, vector<2x32xf32>
    tpu.vector_store %arg9[%c0_27, %c0_28], %75 {strides = array<i32>} : memref<2x32xf32, #tpu.memory_space<vmem>>, vector<2x32xf32>,
    %cst_29 = arith.constant 0.000000e+00 : f32
    %77 = vector.broadcast %cst_29 : f32 to vector<2x32xf32>
    %78 = vector.shape_cast %72 : vector<2x1xi1> to vector<2x1xi1>
    %79 = vector.broadcast %78 : vector<2x1xi1> to vector<2x32xi1>
    %80 = arith.select %79, %65, %77 : vector<2x32xi1>, vector<2x32xf32>
    %c0_30 = arith.constant 0 : index
    %c0_31 = arith.constant 0 : index
    %c0_32 = arith.constant 0 : index
    %c0_33 = arith.constant 0 : index
    %81 = vector.load %arg7[%c0_30, %c0_31, %c0_32, %c0_33] : memref<1x1x2x32xf32, #tpu.memory_space<vmem>>, vector<1x1x2x32xf32>
    %82 = vector.shape_cast %81 : vector<1x1x2x32xf32> to vector<2x32xf32>
    %83 = vector.shape_cast %80 : vector<2x32xf32> to vector<1x1x2x32xf32>
    tpu.vector_store %arg7[%c0_30, %c0_31, %c0_32, %c0_33], %83 {strides = array<i32>} : memref<1x1x2x32xf32, #tpu.memory_space<vmem>>, vector<1x1x2x32xf32>,
    %c7_i32_34 = arith.constant 7 : i32
    %84 = arith.cmpi eq, %arg1, %c7_i32_34 : i32
    %85 = arith.extui %84 : i1 to i32
    %c0_i32_35 = arith.constant 0 : i32
    %86 = arith.cmpi ne, %85, %c0_i32_35 : i32
    scf.if %86 {
      %c0_36 = arith.constant 0 : index
      %c0_37 = arith.constant 0 : index
      %c0_38 = arith.constant 0 : index
      %87 = vector.load %arg8[%c0_36, %c0_37, %c0_38] : memref<1x2x32xf32, #tpu.memory_space<vmem>>, vector<1x2x32xf32>
      %88 = vector.shape_cast %87 : vector<1x2x32xf32> to vector<2x32xf32>
      %89 = vector.shape_cast %75 : vector<2x32xf32> to vector<1x2x32xf32>
      tpu.vector_store %arg8[%c0_36, %c0_37, %c0_38], %89 {strides = array<i32>} : memref<1x2x32xf32, #tpu.memory_space<vmem>>, vector<1x2x32xf32>,
    } else {
    }
    return
  }
  func.func @transform_0(%arg0: i32, %arg1: i32) -> (i32, i32) {
    %c0_i32 = arith.constant 0 : i32
    %c0_i32_0 = arith.constant 0 : i32
    %c0_i32_1 = arith.constant 0 : i32
    return %c0_i32, %c0_i32_0 : i32, i32
  }
  func.func @transform_1(%arg0: i32, %arg1: i32) -> (i32, i32, i32) {
    %c2_i32 = arith.constant 2 : i32
    %0 = arith.muli %c2_i32, %arg1 : i32
    %c7_i32 = arith.constant 7 : i32
    %1 = arith.subi %c7_i32, %0 : i32
    %2 = arith.muli %arg0, %1 : i32
    %3 = arith.addi %arg1, %2 : i32
    %c0_i32 = arith.constant 0 : i32
    %c0_i32_0 = arith.constant 0 : i32
    %c0_i32_1 = arith.constant 0 : i32
    return %3, %c0_i32, %c0_i32_0 : i32, i32, i32
  }
  func.func @transform_2(%arg0: i32, %arg1: i32) -> (i32, i32, i32, i32) {
    %c0_i32 = arith.constant 0 : i32
    %c0_i32_0 = arith.constant 0 : i32
    %c0_i32_1 = arith.constant 0 : i32
    %c0_i32_2 = arith.constant 0 : i32
    return %arg0, %c0_i32, %c0_i32_0, %c0_i32_1 : i32, i32, i32, i32
  }
  func.func @transform_3(%arg0: i32, %arg1: i32) -> (i32, i32, i32, i32) {
    %c0_i32 = arith.constant 0 : i32
    %c0_i32_0 = arith.constant 0 : i32
    %c0_i32_1 = arith.constant 0 : i32
    %c0_i32_2 = arith.constant 0 : i32
    return %arg0, %c0_i32, %c0_i32_0, %c0_i32_1 : i32, i32, i32, i32
  }
  func.func @transform_4(%arg0: i32, %arg1: i32) -> (i32, i32, i32, i32) {
    %c0_i32 = arith.constant 0 : i32
    %c0_i32_0 = arith.constant 0 : i32
    %c0_i32_1 = arith.constant 0 : i32
    %c0_i32_2 = arith.constant 0 : i32
    return %arg0, %c0_i32, %c0_i32_0, %c0_i32_1 : i32, i32, i32, i32
  }
  func.func @transform_5(%arg0: i32, %arg1: i32) -> (i32, i32, i32, i32) {
    %c2_i32 = arith.constant 2 : i32
    %0 = arith.muli %c2_i32, %arg1 : i32
    %c7_i32 = arith.constant 7 : i32
    %1 = arith.subi %c7_i32, %0 : i32
    %2 = arith.muli %arg0, %1 : i32
    %3 = arith.addi %arg1, %2 : i32
    %c0_i32 = arith.constant 0 : i32
    %c0_i32_0 = arith.constant 0 : i32
    %c0_i32_1 = arith.constant 0 : i32
    return %arg0, %3, %c0_i32, %c0_i32_0 : i32, i32, i32, i32
  }
  func.func @transform_6(%arg0: i32, %arg1: i32) -> (i32, i32, i32) {
    %c0_i32 = arith.constant 0 : i32
    %c0_i32_0 = arith.constant 0 : i32
    %c0_i32_1 = arith.constant 0 : i32
    return %arg0, %c0_i32, %c0_i32_0 : i32, i32, i32
  }
}

module attributes {stable_mosaic.version = 11 : i64} {
  func.func @_decoder_kernel(%arg0: i32, %arg1: memref<1x2x32xf32, #tpu.memory_space<vmem>>, %arg2: memref<1x2x1xi32, #tpu.memory_space<vmem>>, %arg3: memref<2x1xi32, #tpu.memory_space<vmem>>, %arg4: memref<2x8x32xf32, #tpu.memory_space<vmem>>, %arg5: memref<2x32xf32, #tpu.memory_space<vmem>>, %arg6: memref<2x32xf32, #tpu.memory_space<vmem>>, %arg7: memref<3x32x32xf32, #tpu.memory_space<vmem>>, %arg8: memref<3x32x32xf32, #tpu.memory_space<vmem>>, %arg9: memref<4x1x32xf32, #tpu.memory_space<vmem>>, %arg10: memref<3x32x32xf32, #tpu.memory_space<vmem>>, %arg11: memref<3x32x32xf32, #tpu.memory_space<vmem>>, %arg12: memref<4x1x32xf32, #tpu.memory_space<vmem>>, %arg13: memref<32x32xf32, #tpu.memory_space<vmem>>, %arg14: memref<32x32xf32, #tpu.memory_space<vmem>>, %arg15: memref<1x32xf32, #tpu.memory_space<vmem>>, %arg16: memref<32x16xf32, #tpu.memory_space<vmem>>, %arg17: memref<1x16xf32, #tpu.memory_space<vmem>>, %arg18: memref<1x2x16xf32, #tpu.memory_space<vmem>>, %arg19: memref<1x1xf32, #tpu.memory_space<vmem>>, %arg20: memref<2x32xf32, #tpu.memory_space<vmem>>, %arg21: memref<2x32xf32, #tpu.memory_space<vmem>>, %arg22: memref<1x1xf32, #tpu.memory_space<vmem>>) attributes {dimension_semantics = [#tpu.dimension_semantics<arbitrary>], iteration_bounds = array<i64: 8>, scalar_prefetch = 0 : i64, scratch_operands = 3 : i64, tpu.core_type = #tpu.core_type<tc>, window_params = [{transform_indices = @transform_0, window_bounds = array<i64: 1, 2, 32>}, {transform_indices = @transform_1, window_bounds = array<i64: 1, 2, 1>}, {pipeline_mode = #tpu.pipeline_mode<synchronous>, transform_indices = @transform_2, window_bounds = array<i64: 2, 1>}, {pipeline_mode = #tpu.pipeline_mode<synchronous>, transform_indices = @transform_3, window_bounds = array<i64: 2, 8, 32>}, {pipeline_mode = #tpu.pipeline_mode<synchronous>, transform_indices = @transform_4, window_bounds = array<i64: 2, 32>}, {pipeline_mode = #tpu.pipeline_mode<synchronous>, transform_indices = @transform_5, window_bounds = array<i64: 2, 32>}, {pipeline_mode = #tpu.pipeline_mode<synchronous>, transform_indices = @transform_6, window_bounds = array<i64: 3, 32, 32>}, {pipeline_mode = #tpu.pipeline_mode<synchronous>, transform_indices = @transform_7, window_bounds = array<i64: 3, 32, 32>}, {pipeline_mode = #tpu.pipeline_mode<synchronous>, transform_indices = @transform_8, window_bounds = array<i64: 4, 1, 32>}, {pipeline_mode = #tpu.pipeline_mode<synchronous>, transform_indices = @transform_9, window_bounds = array<i64: 3, 32, 32>}, {pipeline_mode = #tpu.pipeline_mode<synchronous>, transform_indices = @transform_10, window_bounds = array<i64: 3, 32, 32>}, {pipeline_mode = #tpu.pipeline_mode<synchronous>, transform_indices = @transform_11, window_bounds = array<i64: 4, 1, 32>}, {pipeline_mode = #tpu.pipeline_mode<synchronous>, transform_indices = @transform_12, window_bounds = array<i64: 32, 32>}, {pipeline_mode = #tpu.pipeline_mode<synchronous>, transform_indices = @transform_13, window_bounds = array<i64: 32, 32>}, {pipeline_mode = #tpu.pipeline_mode<synchronous>, transform_indices = @transform_14, window_bounds = array<i64: 1, 32>}, {pipeline_mode = #tpu.pipeline_mode<synchronous>, transform_indices = @transform_15, window_bounds = array<i64: 32, 16>}, {pipeline_mode = #tpu.pipeline_mode<synchronous>, transform_indices = @transform_16, window_bounds = array<i64: 1, 16>}, {transform_indices = @transform_17, window_bounds = array<i64: 1, 2, 16>}, {pipeline_mode = #tpu.pipeline_mode<synchronous>, transform_indices = @transform_18, window_bounds = array<i64: 1, 1>}]} {
    %c0_i32 = arith.constant 0 : i32
    %0 = arith.cmpi eq, %arg0, %c0_i32 : i32
    %1 = arith.extui %0 : i1 to i32
    %c0_i32_0 = arith.constant 0 : i32
    %2 = arith.cmpi ne, %1, %c0_i32_0 : i32
    scf.if %2 {
      %c0_85 = arith.constant 0 : index
      %c0_86 = arith.constant 0 : index
      %194 = vector.load %arg5[%c0_85, %c0_86] : memref<2x32xf32, #tpu.memory_space<vmem>>, vector<2x32xf32>
      %c0_87 = arith.constant 0 : index
      %c0_88 = arith.constant 0 : index
      %195 = vector.load %arg20[%c0_87, %c0_88] : memref<2x32xf32, #tpu.memory_space<vmem>>, vector<2x32xf32>
      tpu.vector_store %arg20[%c0_87, %c0_88], %194 {strides = array<i32>} : memref<2x32xf32, #tpu.memory_space<vmem>>, vector<2x32xf32>,
      %c0_89 = arith.constant 0 : index
      %c0_90 = arith.constant 0 : index
      %196 = vector.load %arg6[%c0_89, %c0_90] : memref<2x32xf32, #tpu.memory_space<vmem>>, vector<2x32xf32>
      %c0_91 = arith.constant 0 : index
      %c0_92 = arith.constant 0 : index
      %197 = vector.load %arg21[%c0_91, %c0_92] : memref<2x32xf32, #tpu.memory_space<vmem>>, vector<2x32xf32>
      tpu.vector_store %arg21[%c0_91, %c0_92], %196 {strides = array<i32>} : memref<2x32xf32, #tpu.memory_space<vmem>>, vector<2x32xf32>,
      %cst_93 = arith.constant 0.000000e+00 : f32
      %198 = vector.broadcast %cst_93 : f32 to vector<1x1xf32>
      %c0_94 = arith.constant 0 : index
      %c0_95 = arith.constant 0 : index
      %199 = vector.load %arg22[%c0_94, %c0_95] : memref<1x1xf32, #tpu.memory_space<vmem>>, vector<1x1xf32>
      tpu.vector_store %arg22[%c0_94, %c0_95], %198 {strides = array<i32>} : memref<1x1xf32, #tpu.memory_space<vmem>>, vector<1x1xf32>,
    } else {
    }
    %c0 = arith.constant 0 : index
    %c0_1 = arith.constant 0 : index
    %c0_2 = arith.constant 0 : index
    %3 = vector.load %arg1[%c0, %c0_1, %c0_2] : memref<1x2x32xf32, #tpu.memory_space<vmem>>, vector<1x2x32xf32>
    %4 = vector.shape_cast %3 : vector<1x2x32xf32> to vector<2x32xf32>
    %c0_3 = arith.constant 0 : index
    %c0_4 = arith.constant 0 : index
    %5 = vector.load %arg20[%c0_3, %c0_4] : memref<2x32xf32, #tpu.memory_space<vmem>>, vector<2x32xf32>
    %c0_5 = arith.constant 0 : index
    %c0_6 = arith.constant 0 : index
    %c0_7 = arith.constant 0 : index
    %6 = vector.load %arg7[%c0_5, %c0_6, %c0_7] : memref<3x32x32xf32, #tpu.memory_space<vmem>>, vector<3x32x32xf32>
    %c0_8 = arith.constant 0 : index
    %c0_9 = arith.constant 0 : index
    %c0_10 = arith.constant 0 : index
    %7 = vector.load %arg8[%c0_8, %c0_9, %c0_10] : memref<3x32x32xf32, #tpu.memory_space<vmem>>, vector<3x32x32xf32>
    %c0_11 = arith.constant 0 : index
    %c0_12 = arith.constant 0 : index
    %c0_13 = arith.constant 0 : index
    %8 = vector.load %arg9[%c0_11, %c0_12, %c0_13] : memref<4x1x32xf32, #tpu.memory_space<vmem>>, vector<4x1x32xf32>
    %9 = vector.extract_strided_slice %6 {offsets = [0, 0, 0], sizes = [1, 32, 32], strides = [1, 1, 1]} : vector<3x32x32xf32> to vector<1x32x32xf32>
    %10 = vector.shape_cast %9 : vector<1x32x32xf32> to vector<32x32xf32>
    %cst = arith.constant dense<0.000000e+00> : vector<2x32xf32>
    %11 = tpu.matmul %4, %10, %cst {dimension_numbers = #tpu.dot_dimension_numbers<[1], [0], [0], [1], [0, 0, 1, 1], [], []>} : vector<2x32xf32>, vector<32x32xf32>, vector<2x32xf32> -> vector<2x32xf32>
    %12 = vector.extract_strided_slice %7 {offsets = [0, 0, 0], sizes = [1, 32, 32], strides = [1, 1, 1]} : vector<3x32x32xf32> to vector<1x32x32xf32>
    %13 = vector.shape_cast %12 : vector<1x32x32xf32> to vector<32x32xf32>
    %cst_14 = arith.constant dense<0.000000e+00> : vector<2x32xf32>
    %14 = tpu.matmul %5, %13, %cst_14 {dimension_numbers = #tpu.dot_dimension_numbers<[1], [0], [0], [1], [0, 0, 1, 1], [], []>} : vector<2x32xf32>, vector<32x32xf32>, vector<2x32xf32> -> vector<2x32xf32>
    %15 = arith.addf %11, %14 : vector<2x32xf32>
    %16 = vector.extract_strided_slice %8 {offsets = [0, 0, 0], sizes = [1, 1, 32], strides = [1, 1, 1]} : vector<4x1x32xf32> to vector<1x1x32xf32>
    %17 = vector.shape_cast %16 : vector<1x1x32xf32> to vector<1x32xf32>
    %18 = vector.broadcast %17 : vector<1x32xf32> to vector<2x32xf32>
    %19 = arith.addf %15, %18 : vector<2x32xf32>
    %20 = arith.negf %19 : vector<2x32xf32>
    %21 = math.exp %20 : vector<2x32xf32>
    %cst_15 = arith.constant 1.000000e+00 : f32
    %22 = vector.broadcast %cst_15 : f32 to vector<2x32xf32>
    %23 = arith.addf %22, %21 : vector<2x32xf32>
    %24 = arith.divf %22, %23 : vector<2x32xf32>
    %25 = vector.extract_strided_slice %6 {offsets = [1, 0, 0], sizes = [1, 32, 32], strides = [1, 1, 1]} : vector<3x32x32xf32> to vector<1x32x32xf32>
    %26 = vector.shape_cast %25 : vector<1x32x32xf32> to vector<32x32xf32>
    %cst_16 = arith.constant dense<0.000000e+00> : vector<2x32xf32>
    %27 = tpu.matmul %4, %26, %cst_16 {dimension_numbers = #tpu.dot_dimension_numbers<[1], [0], [0], [1], [0, 0, 1, 1], [], []>} : vector<2x32xf32>, vector<32x32xf32>, vector<2x32xf32> -> vector<2x32xf32>
    %28 = vector.extract_strided_slice %7 {offsets = [1, 0, 0], sizes = [1, 32, 32], strides = [1, 1, 1]} : vector<3x32x32xf32> to vector<1x32x32xf32>
    %29 = vector.shape_cast %28 : vector<1x32x32xf32> to vector<32x32xf32>
    %cst_17 = arith.constant dense<0.000000e+00> : vector<2x32xf32>
    %30 = tpu.matmul %5, %29, %cst_17 {dimension_numbers = #tpu.dot_dimension_numbers<[1], [0], [0], [1], [0, 0, 1, 1], [], []>} : vector<2x32xf32>, vector<32x32xf32>, vector<2x32xf32> -> vector<2x32xf32>
    %31 = arith.addf %27, %30 : vector<2x32xf32>
    %32 = vector.extract_strided_slice %8 {offsets = [1, 0, 0], sizes = [1, 1, 32], strides = [1, 1, 1]} : vector<4x1x32xf32> to vector<1x1x32xf32>
    %33 = vector.shape_cast %32 : vector<1x1x32xf32> to vector<1x32xf32>
    %34 = vector.broadcast %33 : vector<1x32xf32> to vector<2x32xf32>
    %35 = arith.addf %31, %34 : vector<2x32xf32>
    %36 = arith.negf %35 : vector<2x32xf32>
    %37 = math.exp %36 : vector<2x32xf32>
    %cst_18 = arith.constant 1.000000e+00 : f32
    %38 = vector.broadcast %cst_18 : f32 to vector<2x32xf32>
    %39 = arith.addf %38, %37 : vector<2x32xf32>
    %40 = arith.divf %38, %39 : vector<2x32xf32>
    %41 = vector.extract_strided_slice %6 {offsets = [2, 0, 0], sizes = [1, 32, 32], strides = [1, 1, 1]} : vector<3x32x32xf32> to vector<1x32x32xf32>
    %42 = vector.shape_cast %41 : vector<1x32x32xf32> to vector<32x32xf32>
    %cst_19 = arith.constant dense<0.000000e+00> : vector<2x32xf32>
    %43 = tpu.matmul %4, %42, %cst_19 {dimension_numbers = #tpu.dot_dimension_numbers<[1], [0], [0], [1], [0, 0, 1, 1], [], []>} : vector<2x32xf32>, vector<32x32xf32>, vector<2x32xf32> -> vector<2x32xf32>
    %44 = vector.extract_strided_slice %8 {offsets = [2, 0, 0], sizes = [1, 1, 32], strides = [1, 1, 1]} : vector<4x1x32xf32> to vector<1x1x32xf32>
    %45 = vector.shape_cast %44 : vector<1x1x32xf32> to vector<1x32xf32>
    %46 = vector.broadcast %45 : vector<1x32xf32> to vector<2x32xf32>
    %47 = arith.addf %43, %46 : vector<2x32xf32>
    %48 = vector.extract_strided_slice %7 {offsets = [2, 0, 0], sizes = [1, 32, 32], strides = [1, 1, 1]} : vector<3x32x32xf32> to vector<1x32x32xf32>
    %49 = vector.shape_cast %48 : vector<1x32x32xf32> to vector<32x32xf32>
    %cst_20 = arith.constant dense<0.000000e+00> : vector<2x32xf32>
    %50 = tpu.matmul %5, %49, %cst_20 {dimension_numbers = #tpu.dot_dimension_numbers<[1], [0], [0], [1], [0, 0, 1, 1], [], []>} : vector<2x32xf32>, vector<32x32xf32>, vector<2x32xf32> -> vector<2x32xf32>
    %51 = vector.extract_strided_slice %8 {offsets = [3, 0, 0], sizes = [1, 1, 32], strides = [1, 1, 1]} : vector<4x1x32xf32> to vector<1x1x32xf32>
    %52 = vector.shape_cast %51 : vector<1x1x32xf32> to vector<1x32xf32>
    %53 = vector.broadcast %52 : vector<1x32xf32> to vector<2x32xf32>
    %54 = arith.addf %50, %53 : vector<2x32xf32>
    %55 = arith.mulf %24, %54 : vector<2x32xf32>
    %56 = arith.addf %47, %55 : vector<2x32xf32>
    %57 = math.tanh %56 : vector<2x32xf32>
    %cst_21 = arith.constant 1.000000e+00 : f32
    %58 = vector.broadcast %cst_21 : f32 to vector<2x32xf32>
    %59 = arith.subf %58, %40 : vector<2x32xf32>
    %60 = arith.mulf %59, %57 : vector<2x32xf32>
    %61 = arith.mulf %40, %5 : vector<2x32xf32>
    %62 = arith.addf %60, %61 : vector<2x32xf32>
    %c0_22 = arith.constant 0 : index
    %c0_23 = arith.constant 0 : index
    %63 = vector.load %arg21[%c0_22, %c0_23] : memref<2x32xf32, #tpu.memory_space<vmem>>, vector<2x32xf32>
    %c0_24 = arith.constant 0 : index
    %c0_25 = arith.constant 0 : index
    %c0_26 = arith.constant 0 : index
    %64 = vector.load %arg10[%c0_24, %c0_25, %c0_26] : memref<3x32x32xf32, #tpu.memory_space<vmem>>, vector<3x32x32xf32>
    %c0_27 = arith.constant 0 : index
    %c0_28 = arith.constant 0 : index
    %c0_29 = arith.constant 0 : index
    %65 = vector.load %arg11[%c0_27, %c0_28, %c0_29] : memref<3x32x32xf32, #tpu.memory_space<vmem>>, vector<3x32x32xf32>
    %c0_30 = arith.constant 0 : index
    %c0_31 = arith.constant 0 : index
    %c0_32 = arith.constant 0 : index
    %66 = vector.load %arg12[%c0_30, %c0_31, %c0_32] : memref<4x1x32xf32, #tpu.memory_space<vmem>>, vector<4x1x32xf32>
    %67 = vector.extract_strided_slice %64 {offsets = [0, 0, 0], sizes = [1, 32, 32], strides = [1, 1, 1]} : vector<3x32x32xf32> to vector<1x32x32xf32>
    %68 = vector.shape_cast %67 : vector<1x32x32xf32> to vector<32x32xf32>
    %cst_33 = arith.constant dense<0.000000e+00> : vector<2x32xf32>
    %69 = tpu.matmul %62, %68, %cst_33 {dimension_numbers = #tpu.dot_dimension_numbers<[1], [0], [0], [1], [0, 0, 1, 1], [], []>} : vector<2x32xf32>, vector<32x32xf32>, vector<2x32xf32> -> vector<2x32xf32>
    %70 = vector.extract_strided_slice %65 {offsets = [0, 0, 0], sizes = [1, 32, 32], strides = [1, 1, 1]} : vector<3x32x32xf32> to vector<1x32x32xf32>
    %71 = vector.shape_cast %70 : vector<1x32x32xf32> to vector<32x32xf32>
    %cst_34 = arith.constant dense<0.000000e+00> : vector<2x32xf32>
    %72 = tpu.matmul %63, %71, %cst_34 {dimension_numbers = #tpu.dot_dimension_numbers<[1], [0], [0], [1], [0, 0, 1, 1], [], []>} : vector<2x32xf32>, vector<32x32xf32>, vector<2x32xf32> -> vector<2x32xf32>
    %73 = arith.addf %69, %72 : vector<2x32xf32>
    %74 = vector.extract_strided_slice %66 {offsets = [0, 0, 0], sizes = [1, 1, 32], strides = [1, 1, 1]} : vector<4x1x32xf32> to vector<1x1x32xf32>
    %75 = vector.shape_cast %74 : vector<1x1x32xf32> to vector<1x32xf32>
    %76 = vector.broadcast %75 : vector<1x32xf32> to vector<2x32xf32>
    %77 = arith.addf %73, %76 : vector<2x32xf32>
    %78 = arith.negf %77 : vector<2x32xf32>
    %79 = math.exp %78 : vector<2x32xf32>
    %cst_35 = arith.constant 1.000000e+00 : f32
    %80 = vector.broadcast %cst_35 : f32 to vector<2x32xf32>
    %81 = arith.addf %80, %79 : vector<2x32xf32>
    %82 = arith.divf %80, %81 : vector<2x32xf32>
    %83 = vector.extract_strided_slice %64 {offsets = [1, 0, 0], sizes = [1, 32, 32], strides = [1, 1, 1]} : vector<3x32x32xf32> to vector<1x32x32xf32>
    %84 = vector.shape_cast %83 : vector<1x32x32xf32> to vector<32x32xf32>
    %cst_36 = arith.constant dense<0.000000e+00> : vector<2x32xf32>
    %85 = tpu.matmul %62, %84, %cst_36 {dimension_numbers = #tpu.dot_dimension_numbers<[1], [0], [0], [1], [0, 0, 1, 1], [], []>} : vector<2x32xf32>, vector<32x32xf32>, vector<2x32xf32> -> vector<2x32xf32>
    %86 = vector.extract_strided_slice %65 {offsets = [1, 0, 0], sizes = [1, 32, 32], strides = [1, 1, 1]} : vector<3x32x32xf32> to vector<1x32x32xf32>
    %87 = vector.shape_cast %86 : vector<1x32x32xf32> to vector<32x32xf32>
    %cst_37 = arith.constant dense<0.000000e+00> : vector<2x32xf32>
    %88 = tpu.matmul %63, %87, %cst_37 {dimension_numbers = #tpu.dot_dimension_numbers<[1], [0], [0], [1], [0, 0, 1, 1], [], []>} : vector<2x32xf32>, vector<32x32xf32>, vector<2x32xf32> -> vector<2x32xf32>
    %89 = arith.addf %85, %88 : vector<2x32xf32>
    %90 = vector.extract_strided_slice %66 {offsets = [1, 0, 0], sizes = [1, 1, 32], strides = [1, 1, 1]} : vector<4x1x32xf32> to vector<1x1x32xf32>
    %91 = vector.shape_cast %90 : vector<1x1x32xf32> to vector<1x32xf32>
    %92 = vector.broadcast %91 : vector<1x32xf32> to vector<2x32xf32>
    %93 = arith.addf %89, %92 : vector<2x32xf32>
    %94 = arith.negf %93 : vector<2x32xf32>
    %95 = math.exp %94 : vector<2x32xf32>
    %cst_38 = arith.constant 1.000000e+00 : f32
    %96 = vector.broadcast %cst_38 : f32 to vector<2x32xf32>
    %97 = arith.addf %96, %95 : vector<2x32xf32>
    %98 = arith.divf %96, %97 : vector<2x32xf32>
    %99 = vector.extract_strided_slice %64 {offsets = [2, 0, 0], sizes = [1, 32, 32], strides = [1, 1, 1]} : vector<3x32x32xf32> to vector<1x32x32xf32>
    %100 = vector.shape_cast %99 : vector<1x32x32xf32> to vector<32x32xf32>
    %cst_39 = arith.constant dense<0.000000e+00> : vector<2x32xf32>
    %101 = tpu.matmul %62, %100, %cst_39 {dimension_numbers = #tpu.dot_dimension_numbers<[1], [0], [0], [1], [0, 0, 1, 1], [], []>} : vector<2x32xf32>, vector<32x32xf32>, vector<2x32xf32> -> vector<2x32xf32>
    %102 = vector.extract_strided_slice %66 {offsets = [2, 0, 0], sizes = [1, 1, 32], strides = [1, 1, 1]} : vector<4x1x32xf32> to vector<1x1x32xf32>
    %103 = vector.shape_cast %102 : vector<1x1x32xf32> to vector<1x32xf32>
    %104 = vector.broadcast %103 : vector<1x32xf32> to vector<2x32xf32>
    %105 = arith.addf %101, %104 : vector<2x32xf32>
    %106 = vector.extract_strided_slice %65 {offsets = [2, 0, 0], sizes = [1, 32, 32], strides = [1, 1, 1]} : vector<3x32x32xf32> to vector<1x32x32xf32>
    %107 = vector.shape_cast %106 : vector<1x32x32xf32> to vector<32x32xf32>
    %cst_40 = arith.constant dense<0.000000e+00> : vector<2x32xf32>
    %108 = tpu.matmul %63, %107, %cst_40 {dimension_numbers = #tpu.dot_dimension_numbers<[1], [0], [0], [1], [0, 0, 1, 1], [], []>} : vector<2x32xf32>, vector<32x32xf32>, vector<2x32xf32> -> vector<2x32xf32>
    %109 = vector.extract_strided_slice %66 {offsets = [3, 0, 0], sizes = [1, 1, 32], strides = [1, 1, 1]} : vector<4x1x32xf32> to vector<1x1x32xf32>
    %110 = vector.shape_cast %109 : vector<1x1x32xf32> to vector<1x32xf32>
    %111 = vector.broadcast %110 : vector<1x32xf32> to vector<2x32xf32>
    %112 = arith.addf %108, %111 : vector<2x32xf32>
    %113 = arith.mulf %82, %112 : vector<2x32xf32>
    %114 = arith.addf %105, %113 : vector<2x32xf32>
    %115 = math.tanh %114 : vector<2x32xf32>
    %cst_41 = arith.constant 1.000000e+00 : f32
    %116 = vector.broadcast %cst_41 : f32 to vector<2x32xf32>
    %117 = arith.subf %116, %98 : vector<2x32xf32>
    %118 = arith.mulf %117, %115 : vector<2x32xf32>
    %119 = arith.mulf %98, %63 : vector<2x32xf32>
    %120 = arith.addf %118, %119 : vector<2x32xf32>
    %c0_42 = arith.constant 0 : index
    %c0_43 = arith.constant 0 : index
    %121 = vector.load %arg20[%c0_42, %c0_43] : memref<2x32xf32, #tpu.memory_space<vmem>>, vector<2x32xf32>
    tpu.vector_store %arg20[%c0_42, %c0_43], %62 {strides = array<i32>} : memref<2x32xf32, #tpu.memory_space<vmem>>, vector<2x32xf32>,
    %c0_44 = arith.constant 0 : index
    %c0_45 = arith.constant 0 : index
    %122 = vector.load %arg21[%c0_44, %c0_45] : memref<2x32xf32, #tpu.memory_space<vmem>>, vector<2x32xf32>
    tpu.vector_store %arg21[%c0_44, %c0_45], %120 {strides = array<i32>} : memref<2x32xf32, #tpu.memory_space<vmem>>, vector<2x32xf32>,
    %c0_46 = arith.constant 0 : index
    %c0_47 = arith.constant 0 : index
    %c0_48 = arith.constant 0 : index
    %123 = vector.load %arg4[%c0_46, %c0_47, %c0_48] : memref<2x8x32xf32, #tpu.memory_space<vmem>>, vector<2x8x32xf32>
    %124 = vector.shape_cast %120 : vector<2x32xf32> to vector<2x1x32xf32>
    "tpu.trace_start"() <{level = 10 : i32, message = "bqh,bth->bqt"}> : () -> ()
    %cst_49 = arith.constant dense<0.000000e+00> : vector<2x1x8xf32>
    %125 = tpu.matmul %124, %123, %cst_49 {dimension_numbers = #tpu.dot_dimension_numbers<[2], [2], [1], [1], [0, 0, 0, 1, 1, 1], [0], [0]>} : vector<2x1x32xf32>, vector<2x8x32xf32>, vector<2x1x8xf32> -> vector<2x1x8xf32>
    "tpu.trace_stop"() : () -> ()
    %cst_50 = arith.constant dense<0xFF800000> : vector<2x1xf32>
    %126 = vector.multi_reduction <maximumf>, %125, %cst_50 [2] : vector<2x1x8xf32> to vector<2x1xf32>
    %127 = vector.shape_cast %126 : vector<2x1xf32> to vector<2x1x1xf32>
    %128 = vector.broadcast %127 : vector<2x1x1xf32> to vector<2x1x8xf32>
    %129 = arith.subf %125, %128 : vector<2x1x8xf32>
    %130 = math.exp %129 : vector<2x1x8xf32>
    %cst_51 = arith.constant dense<0.000000e+00> : vector<2x1xf32>
    %131 = vector.multi_reduction <add>, %130, %cst_51 [2] : vector<2x1x8xf32> to vector<2x1xf32>
    %132 = vector.shape_cast %131 : vector<2x1xf32> to vector<2x1x1xf32>
    %133 = tpu.reciprocal %132 {approx = true} : vector<2x1x1xf32> -> vector<2x1x1xf32>
    %134 = vector.broadcast %133 : vector<2x1x1xf32> to vector<2x1x8xf32>
    %135 = arith.mulf %130, %134 : vector<2x1x8xf32>
    "tpu.trace_start"() <{level = 10 : i32, message = "bqt,bth->bqh"}> : () -> ()
    %cst_52 = arith.constant dense<0.000000e+00> : vector<2x1x32xf32>
    %136 = tpu.matmul %135, %123, %cst_52 {dimension_numbers = #tpu.dot_dimension_numbers<[2], [1], [1], [2], [0, 0, 0, 1, 1, 2], [0], [0]>} : vector<2x1x8xf32>, vector<2x8x32xf32>, vector<2x1x32xf32> -> vector<2x1x32xf32>
    "tpu.trace_stop"() : () -> ()
    %137 = vector.shape_cast %136 : vector<2x1x32xf32> to vector<2x32xf32>
    %c0_53 = arith.constant 0 : index
    %c0_54 = arith.constant 0 : index
    %138 = vector.load %arg13[%c0_53, %c0_54] : memref<32x32xf32, #tpu.memory_space<vmem>>, vector<32x32xf32>
    %cst_55 = arith.constant dense<0.000000e+00> : vector<2x32xf32>
    %139 = tpu.matmul %120, %138, %cst_55 {dimension_numbers = #tpu.dot_dimension_numbers<[1], [0], [0], [1], [0, 0, 1, 1], [], []>} : vector<2x32xf32>, vector<32x32xf32>, vector<2x32xf32> -> vector<2x32xf32>
    %c0_56 = arith.constant 0 : index
    %c0_57 = arith.constant 0 : index
    %140 = vector.load %arg14[%c0_56, %c0_57] : memref<32x32xf32, #tpu.memory_space<vmem>>, vector<32x32xf32>
    %cst_58 = arith.constant dense<0.000000e+00> : vector<2x32xf32>
    %141 = tpu.matmul %137, %140, %cst_58 {dimension_numbers = #tpu.dot_dimension_numbers<[1], [0], [0], [1], [0, 0, 1, 1], [], []>} : vector<2x32xf32>, vector<32x32xf32>, vector<2x32xf32> -> vector<2x32xf32>
    %142 = arith.addf %139, %141 : vector<2x32xf32>
    %c0_59 = arith.constant 0 : index
    %c0_60 = arith.constant 0 : index
    %143 = vector.load %arg15[%c0_59, %c0_60] : memref<1x32xf32, #tpu.memory_space<vmem>>, vector<1x32xf32>
    %144 = vector.broadcast %143 : vector<1x32xf32> to vector<2x32xf32>
    %145 = arith.addf %142, %144 : vector<2x32xf32>
    %146 = math.tanh %145 : vector<2x32xf32>
    %c0_61 = arith.constant 0 : index
    %c0_62 = arith.constant 0 : index
    %147 = vector.load %arg16[%c0_61, %c0_62] : memref<32x16xf32, #tpu.memory_space<vmem>>, vector<32x16xf32>
    %cst_63 = arith.constant dense<0.000000e+00> : vector<2x16xf32>
    %148 = tpu.matmul %146, %147, %cst_63 {dimension_numbers = #tpu.dot_dimension_numbers<[1], [0], [0], [1], [0, 0, 1, 1], [], []>} : vector<2x32xf32>, vector<32x16xf32>, vector<2x16xf32> -> vector<2x16xf32>
    %c0_64 = arith.constant 0 : index
    %c0_65 = arith.constant 0 : index
    %149 = vector.load %arg17[%c0_64, %c0_65] : memref<1x16xf32, #tpu.memory_space<vmem>>, vector<1x16xf32>
    %150 = vector.broadcast %149 : vector<1x16xf32> to vector<2x16xf32>
    %151 = arith.addf %148, %150 : vector<2x16xf32>
    %c0_66 = arith.constant 0 : index
    %c0_67 = arith.constant 0 : index
    %c0_68 = arith.constant 0 : index
    %152 = vector.load %arg18[%c0_66, %c0_67, %c0_68] : memref<1x2x16xf32, #tpu.memory_space<vmem>>, vector<1x2x16xf32>
    %153 = vector.shape_cast %152 : vector<1x2x16xf32> to vector<2x16xf32>
    %154 = vector.shape_cast %151 : vector<2x16xf32> to vector<1x2x16xf32>
    tpu.vector_store %arg18[%c0_66, %c0_67, %c0_68], %154 {strides = array<i32>} : memref<1x2x16xf32, #tpu.memory_space<vmem>>, vector<1x2x16xf32>,
    %cst_69 = arith.constant dense<0xFF800000> : vector<2xf32>
    %155 = vector.multi_reduction <maximumf>, %151, %cst_69 [1] : vector<2x16xf32> to vector<2xf32>
    %156 = vector.shape_cast %155 : vector<2xf32> to vector<2x1xf32>
    %157 = vector.broadcast %156 : vector<2x1xf32> to vector<2x16xf32>
    %158 = arith.subf %151, %157 : vector<2x16xf32>
    %159 = math.exp %158 : vector<2x16xf32>
    %cst_70 = arith.constant dense<0.000000e+00> : vector<2xf32>
    %160 = vector.multi_reduction <add>, %159, %cst_70 [1] : vector<2x16xf32> to vector<2xf32>
    %161 = vector.shape_cast %160 : vector<2xf32> to vector<2x1xf32>
    %162 = math.log %161 : vector<2x1xf32>
    %163 = arith.addf %162, %156 : vector<2x1xf32>
    %164 = vector.broadcast %163 : vector<2x1xf32> to vector<2x16xf32>
    %165 = arith.subf %151, %164 : vector<2x16xf32>
    %c0_71 = arith.constant 0 : index
    %c0_72 = arith.constant 0 : index
    %c0_73 = arith.constant 0 : index
    %166 = vector.load %arg2[%c0_71, %c0_72, %c0_73] : memref<1x2x1xi32, #tpu.memory_space<vmem>>, vector<1x2x1xi32>
    %167 = vector.shape_cast %166 : vector<1x2x1xi32> to vector<2x1xi32>
    %168 = tpu.iota {dimensions = array<i32: 1>} : vector<2x16xi32>
    %169 = vector.broadcast %167 : vector<2x1xi32> to vector<2x16xi32>
    %170 = arith.cmpi eq, %168, %169 : vector<2x16xi32>
    %cst_74 = arith.constant 0.000000e+00 : f32
    %171 = vector.broadcast %cst_74 : f32 to vector<2x16xf32>
    %172 = arith.select %170, %165, %171 : vector<2x16xi1>, vector<2x16xf32>
    %cst_75 = arith.constant dense<0.000000e+00> : vector<2xf32>
    %173 = vector.multi_reduction <add>, %172, %cst_75 [1] : vector<2x16xf32> to vector<2xf32>
    %174 = vector.shape_cast %173 : vector<2xf32> to vector<2x1xf32>
    %cst_76 = arith.constant 0.000000e+00 : f32
    %175 = vector.broadcast %cst_76 : f32 to vector<2x1xf32>
    %176 = arith.subf %175, %174 : vector<2x1xf32>
    %c0_77 = arith.constant 0 : index
    %c0_78 = arith.constant 0 : index
    %177 = vector.load %arg3[%c0_77, %c0_78] : memref<2x1xi32, #tpu.memory_space<vmem>>, vector<2x1xi32>
    %178 = vector.broadcast %arg0 : i32 to vector<2x1xi32>
    %179 = arith.cmpi sgt, %177, %178 : vector<2x1xi32>
    %180 = arith.extui %179 : vector<2x1xi1> to vector<2x1xi32>
    %181 = arith.sitofp %180 : vector<2x1xi32> to vector<2x1xf32>
    %c0_79 = arith.constant 0 : index
    %c0_80 = arith.constant 0 : index
    %182 = vector.load %arg22[%c0_79, %c0_80] : memref<1x1xf32, #tpu.memory_space<vmem>>, vector<1x1xf32>
    %183 = arith.mulf %176, %181 : vector<2x1xf32>
    %184 = vector.shape_cast %183 : vector<2x1xf32> to vector<1x2x1xf32>
    %cst_81 = arith.constant dense<0.000000e+00> : vector<1xf32>
    %185 = vector.multi_reduction <add>, %184, %cst_81 [1, 2] : vector<1x2x1xf32> to vector<1xf32>
    %186 = vector.shape_cast %185 : vector<1xf32> to vector<1x1x1xf32>
    %187 = vector.extract %186[0, 0, 0] : f32 from vector<1x1x1xf32>
    %188 = vector.broadcast %187 : f32 to vector<1x1xf32>
    %189 = arith.addf %182, %188 : vector<1x1xf32>
    %c0_82 = arith.constant 0 : index
    %c0_83 = arith.constant 0 : index
    %190 = vector.load %arg22[%c0_82, %c0_83] : memref<1x1xf32, #tpu.memory_space<vmem>>, vector<1x1xf32>
    tpu.vector_store %arg22[%c0_82, %c0_83], %189 {strides = array<i32>} : memref<1x1xf32, #tpu.memory_space<vmem>>, vector<1x1xf32>,
    %c7_i32 = arith.constant 7 : i32
    %191 = arith.cmpi eq, %arg0, %c7_i32 : i32
    %192 = arith.extui %191 : i1 to i32
    %c0_i32_84 = arith.constant 0 : i32
    %193 = arith.cmpi ne, %192, %c0_i32_84 : i32
    scf.if %193 {
      %c0_85 = arith.constant 0 : index
      %c0_86 = arith.constant 0 : index
      %194 = vector.load %arg3[%c0_85, %c0_86] : memref<2x1xi32, #tpu.memory_space<vmem>>, vector<2x1xi32>
      %195 = vector.shape_cast %194 : vector<2x1xi32> to vector<1x2x1xi32>
      %cst_87 = arith.constant dense<0> : vector<1xi32>
      %196 = vector.multi_reduction <add>, %195, %cst_87 [1, 2] : vector<1x2x1xi32> to vector<1xi32>
      %197 = vector.shape_cast %196 : vector<1xi32> to vector<1x1x1xi32>
      %198 = vector.extract %197[0, 0, 0] : i32 from vector<1x1x1xi32>
      %199 = arith.sitofp %198 : i32 to f32
      %c0_88 = arith.constant 0 : index
      %c0_89 = arith.constant 0 : index
      %200 = vector.load %arg22[%c0_88, %c0_89] : memref<1x1xf32, #tpu.memory_space<vmem>>, vector<1x1xf32>
      %201 = vector.broadcast %199 : f32 to vector<1x1xf32>
      %202 = arith.divf %200, %201 : vector<1x1xf32>
      %c0_90 = arith.constant 0 : index
      %c0_91 = arith.constant 0 : index
      %203 = vector.load %arg19[%c0_90, %c0_91] : memref<1x1xf32, #tpu.memory_space<vmem>>, vector<1x1xf32>
      tpu.vector_store %arg19[%c0_90, %c0_91], %202 {strides = array<i32>} : memref<1x1xf32, #tpu.memory_space<vmem>>, vector<1x1xf32>,
    } else {
    }
    return
  }
  func.func @transform_0(%arg0: i32) -> (i32, i32, i32) {
    %c0_i32 = arith.constant 0 : i32
    %c0_i32_0 = arith.constant 0 : i32
    %c0_i32_1 = arith.constant 0 : i32
    return %arg0, %c0_i32, %c0_i32_0 : i32, i32, i32
  }
  func.func @transform_1(%arg0: i32) -> (i32, i32, i32) {
    %c0_i32 = arith.constant 0 : i32
    %c0_i32_0 = arith.constant 0 : i32
    %c0_i32_1 = arith.constant 0 : i32
    return %arg0, %c0_i32, %c0_i32_0 : i32, i32, i32
  }
  func.func @transform_2(%arg0: i32) -> (i32, i32) {
    %c0_i32 = arith.constant 0 : i32
    %c0_i32_0 = arith.constant 0 : i32
    %c0_i32_1 = arith.constant 0 : i32
    return %c0_i32, %c0_i32_0 : i32, i32
  }
  func.func @transform_3(%arg0: i32) -> (i32, i32, i32) {
    %c0_i32 = arith.constant 0 : i32
    %c0_i32_0 = arith.constant 0 : i32
    %c0_i32_1 = arith.constant 0 : i32
    %c0_i32_2 = arith.constant 0 : i32
    return %c0_i32, %c0_i32_0, %c0_i32_1 : i32, i32, i32
  }
  func.func @transform_4(%arg0: i32) -> (i32, i32) {
    %c0_i32 = arith.constant 0 : i32
    %c0_i32_0 = arith.constant 0 : i32
    %c0_i32_1 = arith.constant 0 : i32
    return %c0_i32, %c0_i32_0 : i32, i32
  }
  func.func @transform_5(%arg0: i32) -> (i32, i32) {
    %c0_i32 = arith.constant 0 : i32
    %c0_i32_0 = arith.constant 0 : i32
    %c0_i32_1 = arith.constant 0 : i32
    return %c0_i32, %c0_i32_0 : i32, i32
  }
  func.func @transform_6(%arg0: i32) -> (i32, i32, i32) {
    %c0_i32 = arith.constant 0 : i32
    %c0_i32_0 = arith.constant 0 : i32
    %c0_i32_1 = arith.constant 0 : i32
    %c0_i32_2 = arith.constant 0 : i32
    return %c0_i32, %c0_i32_0, %c0_i32_1 : i32, i32, i32
  }
  func.func @transform_7(%arg0: i32) -> (i32, i32, i32) {
    %c0_i32 = arith.constant 0 : i32
    %c0_i32_0 = arith.constant 0 : i32
    %c0_i32_1 = arith.constant 0 : i32
    %c0_i32_2 = arith.constant 0 : i32
    return %c0_i32, %c0_i32_0, %c0_i32_1 : i32, i32, i32
  }
  func.func @transform_8(%arg0: i32) -> (i32, i32, i32) {
    %c0_i32 = arith.constant 0 : i32
    %c0_i32_0 = arith.constant 0 : i32
    %c0_i32_1 = arith.constant 0 : i32
    %c0_i32_2 = arith.constant 0 : i32
    return %c0_i32, %c0_i32_0, %c0_i32_1 : i32, i32, i32
  }
  func.func @transform_9(%arg0: i32) -> (i32, i32, i32) {
    %c0_i32 = arith.constant 0 : i32
    %c0_i32_0 = arith.constant 0 : i32
    %c0_i32_1 = arith.constant 0 : i32
    %c0_i32_2 = arith.constant 0 : i32
    return %c0_i32, %c0_i32_0, %c0_i32_1 : i32, i32, i32
  }
  func.func @transform_10(%arg0: i32) -> (i32, i32, i32) {
    %c0_i32 = arith.constant 0 : i32
    %c0_i32_0 = arith.constant 0 : i32
    %c0_i32_1 = arith.constant 0 : i32
    %c0_i32_2 = arith.constant 0 : i32
    return %c0_i32, %c0_i32_0, %c0_i32_1 : i32, i32, i32
  }
  func.func @transform_11(%arg0: i32) -> (i32, i32, i32) {
    %c0_i32 = arith.constant 0 : i32
    %c0_i32_0 = arith.constant 0 : i32
    %c0_i32_1 = arith.constant 0 : i32
    %c0_i32_2 = arith.constant 0 : i32
    return %c0_i32, %c0_i32_0, %c0_i32_1 : i32, i32, i32
  }
  func.func @transform_12(%arg0: i32) -> (i32, i32) {
    %c0_i32 = arith.constant 0 : i32
    %c0_i32_0 = arith.constant 0 : i32
    %c0_i32_1 = arith.constant 0 : i32
    return %c0_i32, %c0_i32_0 : i32, i32
  }
  func.func @transform_13(%arg0: i32) -> (i32, i32) {
    %c0_i32 = arith.constant 0 : i32
    %c0_i32_0 = arith.constant 0 : i32
    %c0_i32_1 = arith.constant 0 : i32
    return %c0_i32, %c0_i32_0 : i32, i32
  }
  func.func @transform_14(%arg0: i32) -> (i32, i32) {
    %c0_i32 = arith.constant 0 : i32
    %c0_i32_0 = arith.constant 0 : i32
    %c0_i32_1 = arith.constant 0 : i32
    return %c0_i32, %c0_i32_0 : i32, i32
  }
  func.func @transform_15(%arg0: i32) -> (i32, i32) {
    %c0_i32 = arith.constant 0 : i32
    %c0_i32_0 = arith.constant 0 : i32
    %c0_i32_1 = arith.constant 0 : i32
    return %c0_i32, %c0_i32_0 : i32, i32
  }
  func.func @transform_16(%arg0: i32) -> (i32, i32) {
    %c0_i32 = arith.constant 0 : i32
    %c0_i32_0 = arith.constant 0 : i32
    %c0_i32_1 = arith.constant 0 : i32
    return %c0_i32, %c0_i32_0 : i32, i32
  }
  func.func @transform_17(%arg0: i32) -> (i32, i32, i32) {
    %c0_i32 = arith.constant 0 : i32
    %c0_i32_0 = arith.constant 0 : i32
    %c0_i32_1 = arith.constant 0 : i32
    return %arg0, %c0_i32, %c0_i32_0 : i32, i32, i32
  }
  func.func @transform_18(%arg0: i32) -> (i32, i32) {
    %c0_i32 = arith.constant 0 : i32
    %c0_i32_0 = arith.constant 0 : i32
    %c0_i32_1 = arith.constant 0 : i32
    return %c0_i32, %c0_i32_0 : i32, i32
  }
}

</mosaic_0001>

<bundles_post_ra>
// kernel: seq2seq_forward.4
= control target key start
LH: loop header
LB: loop body
LE: loop exit
PB: predicated region body
PF: predicated region fallthrough
CT: control target
= control target key end

     0   :  { %s1813_s0 = inlined_call_operand.vmem [shape: s32[2,1], index: 0, kind: input, shape index: {}]   ;;  %s1814_s1 = inlined_call_operand.vmem [shape: f32[8,2,64], index: 1, kind: input, shape index: {}]   ;;  %s1815_s2 = inlined_call_operand.vmem [shape: f32[2,3,64,32], index: 2, kind: input, shape index: {}]   ;;  %s1816_s3 = inlined_call_operand.vmem [shape: f32[2,3,32,32], index: 3, kind: input, shape index: {}]   ;;  %s1817_s4 = inlined_call_operand.vmem [shape: f32[2,4,1,32], index: 4, kind: input, shape index: {}]   ;;  %s1818_s5 = inlined_call_operand.vmem [shape: f32[2,8,2,32], index: 5, kind: output, shape index: {0}]   ;;  %s1819_s6 = inlined_call_operand.hbm [shape: f32[2,2,32], index: 6, kind: output, shape index: {1}]  }
   0x1   :  { %1832 = sst [smem:[#allocation16_spill]] %s1814_s1 }
   0x2   :  { %1833 = sst [smem:[#allocation17_spill]] %s1819_s6 }
   0x3   :  { %12 = vsyncpa [#allocation4], 0 }
   0x4   :  { %14 = vsyncpa [#allocation4 + $0x1], 0  ;;  %s1556_s21 = smov 0   ;;  %s1558_s22 = smov 0  }
   0x5   :  { %s1560_s23 = smov 0   ;;  %s1562_s24 = smov 0  }
   0x6   :  { %s1564_s25 = smov 0   ;;  %s1566_s26 = smov 0  }
   0x7   :  { %s1568_s27 = smov 0   ;;  %s1570_s28 = smov 0  }
   0x8 LB: > { %1834 = sst [smem:[#allocation6_spill]] %s1485_s21  ;;  %s1107_s29 = sadd.s32 4294967295, %s1513_s28   ;;  %s1513_s28 = sphi %s1570_s28, %s20_s28   ;;  %s1509_s27 = sphi %s1568_s27, %s1858_s27   ;;  %s1505_s26 = sphi %s1566_s26, %s1861_s26   ;;  %s1501_s25 = sphi %s1564_s25, %s1856_s25   ;;  %s1497_s24 = sphi %s1562_s24, %s1855_s24   ;;  %s1493_s23 = sphi %s1560_s23, %s1854_s23   ;;  %s1489_s22 = sphi %s1558_s22, %s1860_s22   ;;  %s1485_s21 = sphi %s1556_s21, %s1859_s21  }
   0x9   : > { %1835 = sst [smem:[#allocation7_spill]] %s1493_s23  ;;  %s1108_s30 = sadd.s32 4294967294, %s1513_s28  }
   0xa   : > { %1836 = sst [smem:[#allocation8_spill]] %s1505_s26  ;;  %s29_s7 = sadd.s32 1, %s1505_s26 }
   0xb   : > { %1837 = sst [smem:[#allocation9_spill]] %s1509_s27  ;;  %p30_p0 = scmp.ge.s32.totalorder %s29_s7, 8 }
   0xc   : > { %1838 = sst [smem:[#allocation10_spill]] %s1513_s28  ;;  %s32_s8 = sadd.s32 1, %s1509_s27 }
   0xd   : > { %p218_p1 = scmp.ne.s32.totalorder %s1493_s23, %s1489_s22  ;;  %p219_p2 = scmp.eq.s32.totalorder %s1107_s29, 15 }
   0xe   : > { %s1863_s7 = smov (%p30_p0, %s29_s7), 0  ;;  %s1865_s8 = smov (!%p30_p0, %s32_s8), %s1509_s27 }
   0xf   : > { %1839 = sst [smem:[#allocation11_spill]] %s1863_s7  ;;  %p1605_p3 = por %p219_p2, %p218_p1 }
  0x10   : > { %p224_p4 = scmp.ne.s32.totalorder %s1489_s22, %s1485_s21  ;;  %p34_p5 = scmp.ge.s32.totalorder %s1865_s8, 2 }
  0x11   : > { %s1840_s9 = scalar_select %p1605_p3, 1, 0 }
  0x12   : > { %p225_p6 = scmp.eq.s32.totalorder %s1108_s30, 15  ;;  %p1115_p7 = scmp.ge.s32.totalorder %s1513_s28, 1 }
  0x13   : > { %1841 = sst [smem:[#allocation12_spill]] %s1840_s9  ;;  %p284_p8 = scmp.lt.s32.totalorder %s1513_s28, 17 }
  0x14   : > { %s1867_s8 = smov (%p34_p5, %s1865_s8), 0  ;;  %p1615_p9 = por %p225_p6, %p224_p4 }
  0x15   : > { %1842 = sst [smem:[#allocation13_spill]] %s1867_s8  ;;  %p285_p10 = pnand %p1115_p7, %p284_p8 }
  0x16   : > { %s1843_s10 = scalar_select %p1615_p9, 1, 0 }
  0x17   : > { %s205_s11 = ssub.s32 %s1509_s27, %s1867_s8  ;;  %s208_s12 = sadd.s32 1, %s1493_s23 }
  0x18   : > { %1844 = sst [smem:[#allocation14_spill]] %s1843_s10  ;;  %p206_p11 = scmp.eq.s32.totalorder %s205_s11, 0 }
  0x19   : > { %288 = sbr.rel (%p285_p10) target bundleno = 358 (0x166), region = 40  ;;  %s1822_s14 = sand.u32 (!%p285_p10), 1, %s1489_s22  }
  0x1a   : > { %s1623_s13 = scalar_select %p206_p11, %s1493_s23, %s208_s12  }
  0x1b   : > { %s1117_s15 = sshll.u32 (!%p285_p10), %s1497_s24, 1  ;;  %s1629_s16 = sshll.u32 (!%p285_p10), %s1822_s14, 1 }
  0x1c   : > { %1845 = sst [smem:[#allocation15_spill]] %s1623_s13  ;;  %s344_s17 = ssub.s32 (!%p285_p10), 7, %s1117_s15 }
  0x1d   : > { %s345_s18 = smul.u32 (!%p285_p10), %s1501_s25, %s344_s17  ;;  %p355_p12 = scmp.lt.s32.totalorder (!%p285_p10), %s1501_s25, 1 }
  0x1e   : > { %s1846_s1 = sld [smem:[#allocation16_spill]] (!%p285_p10)  ;;  %p1125_p0 = scmp.ne.s32.totalorder (!%p285_p10), %s1497_s24, 0 }
  0x1f   : > { %s1634_s19 = sadd.s32 (!%p285_p10), %s1497_s24, %s345_s18 }
  0x20   : > { %p347_p13 = scmp.lt.s32.totalorder %s1634_s19, 7  ;;  %vm389_vm0 = vcmask (!%p1125_p0), 254976   ;;  %v1515_v0 = vmov (!%p1125_p0), 0.0  }
  0x21   : > { %s356_s20 = scalar_select %p355_p12, %s1501_s25, 1 }
  0x22   : > { %s348_s29 = scalar_select %p347_p13, %s1634_s19, 7 }
  0x23   : > { %s1330_s30 = smul.u32 192, %s356_s20  ;;  %s1121_s11 = sshll.u32 %s356_s20, 2  ;;  %390 = vst.msk [vmem:[#allocation2] sm:$0x3] (!%p1125_p0), %vm389_vm0, %v1515_v0 }
  0x24   : > { %s1118_s12 = sshll.u32 %s348_s29, 1  ;;  %s1331_s8 = smul.u32 96, %s356_s20 }
  0x25   : > { %s1642_s14 = scalar_lea.vmem %s1846_s1, %s1118_s12  ;;  %s1647_s18 = scalar_lea.vmem %s1815_s2, %s1330_s30 }
  0x26   : > { %s1652_s23 = scalar_lea.vmem %s1816_s3, %s1331_s8  ;;  %s1657_s28 = scalar_lea.vmem %s1817_s4, %s1121_s11 }
  0x27   : > { %s1123_s6 = sshll.u32 %s356_s20, 3  ;;  %s342_s30 = scalar_lea.vmem [#allocation3], %s1629_s16 }
  0x28   : > { %s378_s9 = sadd.s32 %s1123_s6, %s348_s29  ;;  %388 = sbr.rel (%p1125_p0) target bundleno = 47 (0x2f), region = 44 }
  0x29   : > { %s1124_s27 = sshll.u32 %s378_s9, 1 }
  0x2a   : > { %s1662_s1 = scalar_lea.vmem %s1818_s5, %s1124_s27 }
  0x2f PF: > { %v417_v1 = vld [vmem:[%s1652_s23] sm:$0xff]  ;;  %v418_v2 = vld [vmem:[%s1652_s23 + $0x8] sm:$0xff]  ;;  %v1516_v4 = vmov 0.0|0.0   ;;  %v419_v7 = vld [vmem:[%s1652_s23 + $0x10] sm:$0xff]  ;;  %vm1517_vm1 = vmmov 0   ;;  %v1518_v12 = vmov 0.0   ;;  %v911_v27 = vstv %s1634_s19 }
  0x30   : > { %v393_v3 = vld [vmem:[%s1647_s18] sm:$0xff]  ;;  %1276 = vmatprep.subr.bf16.mxu0 %v1516_v4  ;;  %1282 = vmatprep.subr.bf16.mxu1 %v1516_v4  ;;  %v1277_v5 = vpack.c.bf16 %v418_v2, %v417_v1  ;;  %v394_v6 = vld [vmem:[%s1647_s18 + $0x8] sm:$0xff]  ;;  %v420_v8 = vld [vmem:[%s1652_s23 + $0x18] sm:$0xff]  ;;  %v1519_v14 = vmov 0   ;;  %vm433_vm2 = vcmask 261120   ;;  %vm507_vm4 = vcmask 523264  }
  0x31   : > { %v1283_v9 = vpack.c.bf16 %v394_v6, %v393_v3  ;;  %v395_v10 = vld [vmem:[%s1647_s18 + $0x10] sm:$0xff]  ;;  %v396_v11 = vld [vmem:[%s1647_s18 + $0x18] sm:$0xff]  ;;  %1194 = vmatprep.mubr.msk.f32.mxu0 %vm1517_vm1, %v1518_v12  ;;  %1213 = vmatprep.mubr.msk.f32.mxu1 %vm1517_vm1, %v1518_v12  ;;  %v1280_v13 = vpack.c.bf16 %v420_v8, %v419_v7  ;;  %v421_v16 = vld [vmem:[%s1652_s23 + $0x20] sm:$0xff]  ;;  %vm919_vm6 = vcmask 254976   ;;  %p1139_p1 = scmp.ne.s32.totalorder %s1497_s24, 7 }
  0x32   : > { %1278 = vmatpush3.bf16.msra.mxu0 %v1277_v5  ;;  %1408 = vset.pattern.permute.xlu0 %v1519_v14  ;;  %v1286_v15 = vpack.c.bf16 %v396_v11, %v395_v10  ;;  %v422_v17 = vld [vmem:[%s1652_s23 + $0x28] sm:$0xff]  ;;  %v397_v18 = vld [vmem:[%s1647_s18 + $0x20] sm:$0xff]  ;;  %v423_v23 = vld [vmem:[%s1652_s23 + $0x30] sm:$0xff] }
  0x33   : > { %1284 = vmatpush3.bf16.msra.mxu1 %v1283_v9  ;;  %1279 = vmatprep.subr.bf16.mxu0 %v1516_v4  ;;  %v398_v19 = vld [vmem:[%s1647_s18 + $0x28] sm:$0xff]  ;;  %v1686_v20 = vld [vmem:[#allocation2] sm:$0x3]  ;;  %v1295_v21 = vpack.c.bf16 %v422_v17, %v421_v16  ;;  %v424_v24 = vld [vmem:[%s1652_s23 + $0x38] sm:$0xff] }
  0x34   : > { %1285 = vmatprep.subr.bf16.mxu1 %v1516_v4  ;;  %v1289_v22 = vpack.c.bf16 %v398_v19, %v397_v18  ;;  %v399_v25 = vld [vmem:[%s1647_s18 + $0x30] sm:$0xff]  ;;  %v400_v26 = vld [vmem:[%s1647_s18 + $0x38] sm:$0xff]  ;;  %v1298_v28 = vpack.c.bf16 %v424_v24, %v423_v23  ;;  %v401_v30 = vld [vmem:[%s1647_s18 + $0x40] sm:$0xff] }
  0x35   : > { %v1292_v29 = vpack.c.bf16 %v400_v26, %v399_v25  ;;  %v402_v31 = vld [vmem:[%s1647_s18 + $0x48] sm:$0xff]  ;;  %v910_v32 = vld [vmem:[%s1813_s0] sm:$0x3]  ;;  %v403_v38 = vld [vmem:[%s1647_s18 + $0x50] sm:$0xff] }
  0x36   : > { %1281 = vmatpush3.bf16.msra.mxu0 %v1280_v13  ;;  %vm912_vm3 = vcmp.gt.s32.totalorder %v910_v32, %v911_v27  ;;  %v409_v33 = vld [vmem:[%s1647_s18 + $0x80] sm:$0xff]  ;;  %v410_v34 = vld [vmem:[%s1647_s18 + $0x88] sm:$0xff]  ;;  %v1301_v36 = vpack.c.bf16 %v402_v31, %v401_v30  ;;  %v404_v39 = vld [vmem:[%s1647_s18 + $0x58] sm:$0xff] }
  0x37   : > { %1287 = vmatpush3.bf16.msra.mxu1 %v1286_v15  ;;  %1294 = vmatprep.subr.bf16.mxu0 %v1516_v4  ;;  %v913_v35 = vsel %vm912_vm3, 1, %v1519_v14  ;;  %v392_v37 = vld [vmem:[%s1642_s14] sm:$0x3]  ;;  %v1313_v40 = vpack.c.bf16 %v410_v34, %v409_v33  ;;  %v411_v41 = vld [vmem:[%s1647_s18 + $0x90] sm:$0xff]  ;;  %v412_v42 = vld [vmem:[%s1647_s18 + $0x98] sm:$0xff]  ;;  %v1304_v43 = vpack.c.bf16 %v404_v39, %v403_v38 }
  0x38   : > { %1288 = vmatprep.subr.bf16.mxu1 %v1516_v4  ;;  %915 = vperm.xlu0 %1408, %v913_v35   ;;  %v405_v44 = vld [vmem:[%s1647_s18 + $0x60] sm:$0xff]  ;;  %v406_v45 = vld [vmem:[%s1647_s18 + $0x68] sm:$0xff]  ;;  %v1316_v46 = vpack.c.bf16 %v412_v42, %v411_v41  ;;  %v407_v50 = vld [vmem:[%s1647_s18 + $0x70] sm:$0xff] }
  0x39   : > { %1195 = vmatmul.mubr.msk.f32.vlgmr.msra.gmra.mrb[0].mxu0 %vm433_vm2, %v1686_v20  ;;  %v413_v47 = vld [vmem:[%s1647_s18 + $0xa0] sm:$0xff]  ;;  %v414_v48 = vld [vmem:[%s1647_s18 + $0xa8] sm:$0xff]  ;;  %v1307_v49 = vpack.c.bf16 %v406_v45, %v405_v44  ;;  %v408_v51 = vld [vmem:[%s1647_s18 + $0x78] sm:$0xff] }
  0x3a   : > { %1296 = vmatpush3.bf16.msra.mxu0 %v1295_v21  ;;  %1224 = vmatprep.mubr.msk.f32.mxu0 %vm1517_vm1, %v1518_v12  ;;  %v1319_v52 = vpack.c.bf16 %v414_v48, %v413_v47  ;;  %v415_v53 = vld [vmem:[%s1647_s18 + $0xb0] sm:$0xff]  ;;  %v416_v54 = vld [vmem:[%s1647_s18 + $0xb8] sm:$0xff]  ;;  %v1310_v55 = vpack.c.bf16 %v408_v51, %v407_v50  ;;  %v425_v56 = vld [vmem:[%s1652_s23 + $0x40] sm:$0xff] }
  0x3b   : > { %1290 = vmatpush3.bf16.msra.mxu1 %v1289_v22  ;;  %1297 = vmatprep.subr.bf16.mxu0 %v1516_v4  ;;  %v426_v57 = vld [vmem:[%s1652_s23 + $0x48] sm:$0xff]  ;;  %v1322_v58 = vpack.c.bf16 %v416_v54, %v415_v53  ;;  %v427_v60 = vld [vmem:[%s1652_s23 + $0x50] sm:$0xff]  ;;  %v428_v61 = vld [vmem:[%s1652_s23 + $0x58] sm:$0xff] }
  0x3c   : > { %1291 = vmatprep.subr.bf16.mxu1 %v1516_v4  ;;  %v1325_v59 = vpack.c.bf16 %v426_v57, %v425_v56  ;;  %v1328_v62 = vpack.c.bf16 %v428_v61, %v427_v60  ;;  %v1128_v2 = vld [vmem:[%s1657_s28] ss:$0 sm:$0xff]  ;;  %v1136_v21 = vld [vmem:[%s1657_s28 + $0x3] ss:$0 sm:$0xff]  ;;  %v1134_v23 = vld [vmem:[%s1657_s28 + $0x2] ss:$0 sm:$0xff] }
  0x3e   : > { %1299 = vmatpush3.bf16.msra.mxu0 %v1298_v28 }
  0x3f   : > { %1293 = vmatpush3.bf16.msra.mxu1 %v1292_v29  ;;  %1300 = vmatprep.subr.bf16.mxu0 %v1516_v4 }
  0x40   : > { %1312 = vmatprep.subr.bf16.mxu1 %v1516_v4 }
  0x41   : > { %1225 = vmatmul.mubr.msk.f32.vlgmr.msra.gmra.mrb[2].mxu0 %vm433_vm2, %v1686_v20 }
  0x42   : > { %1214 = vmatmul.mubr.msk.f32.vlgmr.msra.gmra.mrb[0].mxu1 %vm507_vm4, %v392_v37  ;;  %1302 = vmatpush3.bf16.msra.mxu0 %v1301_v36 }
  0x43   : > { %1303 = vmatprep.subr.bf16.mxu0 %v1516_v4  ;;  %1243 = vmatprep.mubr.msk.f32.mxu0 %vm1517_vm1, %v1518_v12 }
  0x44   : > { %1314 = vmatpush3.bf16.msra.mxu1 %v1313_v40  ;;  %1262 = vmatprep.mubr.msk.f32.mxu1 %vm1517_vm1, %v1518_v12 }
  0x45   : > { %1315 = vmatprep.subr.bf16.mxu1 %v1516_v4 }
  0x46   : > { %1305 = vmatpush3.bf16.msra.mxu0 %v1304_v43 }
  0x47   : > { %1306 = vmatprep.subr.bf16.mxu0 %v1516_v4 }
  0x48   : > { %1317 = vmatpush3.bf16.msra.mxu1 %v1316_v46 }
  0x49   : > { %1318 = vmatprep.subr.bf16.mxu1 %v1516_v4 }
  0x4a   : > { %1308 = vmatpush3.bf16.msra.mxu0 %v1307_v49 }
  0x4b   : > { %1309 = vmatprep.subr.bf16.mxu0 %v1516_v4 }
  0x4c   : > { %1320 = vmatpush3.bf16.msra.mxu1 %v1319_v52 }
  0x4d   : > { %1321 = vmatprep.subr.bf16.mxu1 %v1516_v4 }
  0x4e   : > { %1311 = vmatpush3.bf16.msra.mxu0 %v1310_v55 }
  0x4f   : > { %1324 = vmatprep.subr.bf16.mxu0 %v1516_v4 }
  0x50   : > { %1323 = vmatpush3.bf16.msra.mxu1 %v1322_v58 }
  0x51   : > { %1244 = vmatmul.mubr.msk.f32.vlgmr.msra.gmra.mrb[4].mxu0 %vm507_vm4, %v392_v37 }
  0x52   : > { %1326 = vmatpush3.bf16.msra.mxu0 %v1325_v59  ;;  %1273 = vmatprep.mubr.msk.f32.mxu0 %vm1517_vm1, %v1518_v12 }
  0x53   : > { %1327 = vmatprep.subr.bf16.mxu0 %v1516_v4  ;;  %1263 = vmatmul.mubr.msk.f32.vlgmr.msra.gmra.mrb[2].mxu1 %vm507_vm4, %v392_v37  ;;  %v1132_v4 = vld [vmem:[%s1657_s28 + $0x1] ss:$0 sm:$0xff] }
  0x56   : > { %1329 = vmatpush3.bf16.msra.mxu0 %v1328_v62 }
  0x59   : > { %1274 = vmatmul.mubr.msk.f32.vlgmr.msra.gmra.mrb[6].mxu0 %vm433_vm2, %v1686_v20 }
  0xb7   : > { %v916_v32 = vpop.permute.xlu0 %915 }
  0xb8   : > { %vm917_vm5 = vcmp.eq.s32.totalorder %v916_v32, 1 }
 0x10c   : > { %v503_v63 = vpop.f32.mrb[0].mxu0 }
 0x10d   : > { %v1196_v0 = vpop.f32.mrb[1].mxu0 }
 0x114   : > { %v660_v1 = vpop.f32.mrb[2].mxu0 }
 0x115   : > { %v577_v3 = vpop.f32.mrb[0].mxu1  ;;  %v1226_v5 = vpop.f32.mrb[3].mxu0 }
 0x116   : > { %v578_v6 = vadd.f32 %v577_v3, %v503_v63  ;;  %v1215_v7 = vpop.f32.mrb[1].mxu1 }
 0x118   : > { %v587_v8 = vadd.f32 %v1128_v2, %v578_v6 }
 0x11a   : > { %v1129_v9 = vmul.f32 -1.442695, %v587_v8 }
 0x11c   : > { %1409 = vpow2.f32 %v1129_v9 }
 0x124   : > { %v730_v10 = vpop.f32.mrb[4].mxu0 }
 0x125   : > { %v731_v11 = vadd.f32 %v730_v10, %v660_v1  ;;  %v1245_v12 = vpop.f32.mrb[5].mxu0 }
 0x126   : > { %v1410_v13 = vpop.eup %1409  ;;  %v819_v14 = vpop.f32.mrb[2].mxu1 }
 0x127   : > { %v591_v15 = vadd.f32 1.0, %v1410_v13  ;;  %v740_v16 = vadd.f32 %v1132_v4, %v731_v11  ;;  %v1264_v17 = vpop.f32.mrb[3].mxu1  ;;  %v820_v25 = vadd.f32 %v1134_v23, %v819_v14 }
 0x129   : > { %1411 = vrcp.f32 %v591_v15  ;;  %v1133_v18 = vmul.f32 -1.442695, %v740_v16 }
 0x12b   : > { %1413 = vpow2.f32 %v1133_v18 }
 0x12c   : > { %v895_v19 = vpop.f32.mrb[6].mxu0 }
 0x12d   : > { %v1275_v22 = vpop.f32.mrb[7].mxu0  ;;  %v896_v24 = vadd.f32 %v1136_v21, %v895_v19 }
 0x133   : > { %v1412_v26 = vpop.eup %1411 }
 0x134   : > { %v899_v27 = vmul.f32 %v1412_v26, %v896_v24 }
 0x135   : > { %v1414_v28 = vpop.eup %1413 }
 0x136   : > { %v744_v29 = vadd.f32 1.0, %v1414_v28  ;;  %v900_v30 = vadd.f32 %v899_v27, %v820_v25 }
 0x138   : > { %1415 = vrcp.f32 %v744_v29 }
 0x139   : > { %1417 = vtanh.f32 %v900_v30 }
 0x142   : > { %v1416_v31 = vpop.eup %1415 }
 0x143   : > { %v902_v33 = vsub.f32 1.0, %v1416_v31  ;;  %v1418_v34 = vpop.eup %1417  ;;  %v904_v36 = vmul.f32 %v1416_v31, %v1686_v20 }
 0x144   : > { %926 = sbr.rel (%p1139_p1) target bundleno = 332 (0x14c), region = 48 }
 0x145   : > { %v903_v35 = vmul.f32 %v1418_v34, %v902_v33 }
 0x147   : > { %v905_v37 = vadd.f32 %v904_v36, %v903_v35 }
 0x149   : > { %v918_v38 = vsel %vm917_vm5, %v905_v37, %v1686_v20  ;;  %v921_v39 = vsel %vm917_vm5, %v905_v37, 0.0 }
 0x14a   : > { %920 = vst.msk [vmem:[#allocation2] sm:$0x3] %vm919_vm6, %v918_v38  ;;  %922 = vst.msk [vmem:[%s1662_s1] sm:$0x3] %vm919_vm6, %v921_v39 }
 0x14b   : > { %927 = vst.msk [vmem:[%s342_s30] sm:$0x3] %vm919_vm6, %v918_v38 }
 0x14c PF: > { %s1141_s26 = sshll.u32 %s1501_s25, 5  ;;  %s1848_s9 = sld [smem:[#allocation17_spill]] }
 0x14d   : > { %s961_s13 = sshll.u32 %s342_s30, 4  ;;  %s1849_s1 = sand.u32 1, %s1489_s22   ;;  %s962_s13 = int_to_ptr.vmem [resolvable:$true] %s961_s13 }
 0x14e   : > { %s941_s24 = scalar_lea.sflag [#allocation4], %s1849_s1  ;;  %s1419_s14 = scalar_lea.vmem %s962_s13, 32 }
 0x14f   : > { %p1420_p2 = scmp.ne.s32.totalorder %s962_s13, %s1419_s14  ;;  %s1520_s19 = smov [#allocation3]  }
 0x150   : > { %s1423_s20 = sshll.u32 %s1520_s19, 4  ;;  %s1424_s20 = int_to_ptr.vmem [resolvable:$false] %s1423_s20 }
 0x151   : > { %p1421_p4 = pnand %p1420_p2, %p1605_p3  ;;  %s1425_s29 = scalar_lea.vmem %s1424_s20, 64 }
 0x152   : > { %s1762_s10 = scalar_lea.hbm %s1848_s9, %s1141_s26  ;;  %p1426_p6 = scmp.lt.s32.totalorder %s962_s13, %s1424_s20 }
 0x153   : > { %p1422_p5 = pneg %p1421_p4  ;;  %p1427_p7 = scmp.lt.s32.totalorder %s1425_s29, %s1419_s14 }
 0x155   : > { %p1428_p8 = por %p1427_p7, %p1426_p6 }
 0x157   : > { %p1429_p10 = pnand %p1428_p8, %p1422_p5 }
 0x159   : > { %1432 = shalt.err (!%p1429_p10)
}
 0x15a   : > { %s1433_s25 = scalar_lea.hbm %s1762_s10, 32  ;;  %s1437_s15 = scalar_lea.hbm %s1848_s9, 64 }
 0x15b   : > { %p1434_p11 = scmp.ne.s32.totalorder %s1762_s10, %s1433_s25  ;;  %p1438_p0 = scmp.lt.u32.totalorder %s1762_s10, %s1848_s9 }
 0x15c   : > { %p1439_p1 = scmp.lt.u32.totalorder %s1437_s15, %s1433_s25  ;;  %p1441_p4 = scmp.lt.u32.totalorder %s1433_s25, %s1762_s10 }
 0x15d   : > { %p1435_p12 = pnand %p1434_p11, %p1605_p3 }
 0x15e   : > { %p1440_p2 = por %p1439_p1, %p1438_p0 }
 0x15f   : > { %p1436_p13 = pneg %p1435_p12 }
 0x160   : > { %p1442_p5 = por %p1441_p4, %p1440_p2 }
 0x162   : > { %p1443_p6 = pnand %p1442_p5, %p1436_p13 }
 0x164   : > { %1446 = shalt.err (!%p1443_p6)
}
 0x165   : > { %1332 = dma.vmem_to_hbm [thread:$0]  (%p1605_p3), %s962_s13, 32, %s1762_s10, %s941_s24  }
 0x166 PF: > { %s1850_s27 = sld [smem:[#allocation10_spill]]  ;;  %s1851_s7 = sld [smem:[#allocation6_spill]] }
 0x16c   : > { %p1338_p7 = scmp.ge.s32.totalorder %s1850_s27, 2  ;;  %s988_s30 = sand.u32 1, %s1851_s7  }
 0x16d   : > { %s989_s6 = scalar_lea.sflag [#allocation4], %s988_s30 }
 0x16e   : > { %p1335_p8 = pnand %p1338_p7, %p1615_p9 }
 0x170   : > { %1480 = dma.done.wait (!%p1335_p8), %s989_s6, 32  }
 0x171   : > { %1482 = vsyncadd (!%p1335_p8), %s989_s6, 4294967264  ;;  %s20_s28 = sadd.s32 1, %s1850_s27   ;;  %s1853_s26 = sld [smem:[#allocation7_spill]] }
 0x172   : > { %p17_p10 = scmp.ge.s32.totalorder %s20_s28, 18   ;;  %s1854_s23 = sld [smem:[#allocation15_spill]] }
 0x173   : > { %s1855_s24 = sld [smem:[#allocation8_spill]]  ;;  %s1856_s25 = sld [smem:[#allocation9_spill]] }
 0x174   : > { %s1857_s8 = sld [smem:[#allocation11_spill]]  ;;  %s1858_s27 = sld [smem:[#allocation13_spill]] }
 0x175   : > { %s1859_s21 = smov %s1489_s22  ;;  %19 = sbr.rel (!%p17_p10) target bundleno = 8 (0x8), region = 104 }
 0x177   : > { %s1860_s22 = smov %s1853_s26 }
 0x17a   : > { %s1861_s26 = smov %s1857_s8 }
 0x17c   :  { %994 = vsyncpa [#allocation4], 1 }
 0x17d   :  { %996 = vsyncpa [#allocation4 + $0x1], 1 }

// kernel: seq2seq_forward.3
= control target key start
LH: loop header
LB: loop body
LE: loop exit
PB: predicated region body
PF: predicated region fallthrough
CT: control target
= control target key end

     0   :  { %s1379_s21 = smov 0   ;;  %s1381_s22 = smov 0   ;;  %s1536_s0 = inlined_call_operand.vmem [shape: s32[2,1], index: 0, kind: input, shape index: {}]   ;;  %s1537_s1 = inlined_call_operand.vmem [shape: f32[8,2,32], index: 1, kind: input, shape index: {}]   ;;  %s1538_s2 = inlined_call_operand.vmem [shape: f32[2,3,32,32], index: 2, kind: input, shape index: {}]   ;;  %s1539_s3 = inlined_call_operand.vmem [shape: f32[2,3,32,32], index: 3, kind: input, shape index: {}]   ;;  %s1540_s4 = inlined_call_operand.vmem [shape: f32[2,4,1,32], index: 4, kind: input, shape index: {}]   ;;  %s1541_s5 = inlined_call_operand.vmem [shape: f32[2,8,2,32], index: 5, kind: output, shape index: {0}]   ;;  %s1542_s6 = inlined_call_operand.vmem [shape: f32[2,2,32], index: 6, kind: output, shape index: {1}]  }
   0x1   :  { %1544 = sst [smem:[#allocation6_spill]] %s1538_s2  ;;  %s1383_s23 = smov 0  }
   0x2   :  { %1545 = sst [smem:[#allocation7_spill]] %s1539_s3  ;;  %s1385_s24 = smov 0  }
   0x3   :  { %s1387_s25 = smov 0  }
   0x4 LB: > { %1546 = sst [smem:[#allocation3_spill]] %s1333_s24  ;;  %s26_s26 = sadd.s32 1, %s1329_s23  ;;  %s1337_s25 = sphi %s1387_s25, %s17_s25   ;;  %s1333_s24 = sphi %s1385_s24, %s1556_s24   ;;  %s1329_s23 = sphi %s1383_s23, %s1555_s23   ;;  %s1325_s22 = sphi %s1381_s22, %s1551_s22   ;;  %s1321_s21 = sphi %s1379_s21, %s1554_s21  }
   0x5   : > { %s29_s27 = sadd.s32 1, %s1333_s24  ;;  %p27_p0 = scmp.ge.s32.totalorder %s26_s26, 8 }
   0x6   : > { %p1083_p1 = scmp.ge.s32.totalorder %s1337_s25, 1  ;;  %p281_p2 = scmp.lt.s32.totalorder %s1337_s25, 17 }
   0x7   : > { %s1558_s26 = smov (%p27_p0, %s26_s26), 0  ;;  %s1560_s27 = smov (!%p27_p0, %s29_s27), %s1333_s24 }
   0x8   : > { %1547 = sst [smem:[#allocation4_spill]] %s1558_s26  ;;  %p282_p3 = pnand %p1083_p1, %p281_p2 }
   0x9   : > { %p31_p4 = scmp.ge.s32.totalorder %s1560_s27, 2  ;;  %s1084_s28 = sshll.u32 (!%p282_p3), %s1321_s21, 1 }
   0xa   : > { %285 = sbr.rel (%p282_p3) target bundleno = 307 (0x133), region = 40  ;;  %p351_p5 = scmp.lt.s32.totalorder (!%p282_p3), %s1325_s22, 1 }
   0xb   : > { %s1562_s27 = smov (%p31_p4, %s1560_s27), 0  ;;  %s340_s29 = ssub.s32 (!%p282_p3), 7, %s1084_s28 }
   0xc   : > { %1548 = sst [smem:[#allocation5_spill]] %s1562_s27  ;;  %s341_s30 = smul.u32 (!%p282_p3), %s1325_s22, %s340_s29 }
   0xd   : > { %s1549_s2 = sld [smem:[#allocation6_spill]] (!%p282_p3)  ;;  %s1550_s3 = sld [smem:[#allocation7_spill]] (!%p282_p3) }
   0xe   : > { %s1413_s7 = sadd.s32 (!%p282_p3), %s1321_s21, %s341_s30  ;;  %p1093_p7 = scmp.ne.s32.totalorder (!%p282_p3), %s1321_s21, 0 }
   0xf   : > { %p343_p6 = scmp.lt.s32.totalorder (!%p282_p3), %s1413_s7, 7 }
  0x11   : > { %s1564_s22 = smov (!%p351_p5, %s1325_s22), 1  ;;  %vm389_vm0 = vcmask (!%p1093_p7), 254976   ;;  %v1339_v0 = vmov (!%p1093_p7), 0.0  }
  0x12   : > { %s1242_s8 = smul.u32 96, %s1564_s22  ;;  %s1088_s9 = sshll.u32 %s1564_s22, 2  ;;  %390 = vst.msk [vmem:[#allocation2] sm:$0x3] (!%p1093_p7), %vm389_vm0, %v1339_v0 }
  0x13   : > { %s1090_s10 = sshll.u32 %s1564_s22, 3  ;;  %s1430_s28 = scalar_lea.vmem %s1540_s4, %s1088_s9 }
  0x14   : > { %s344_s11 = scalar_select %p343_p6, %s1413_s7, 7 }
  0x15   : > { %s1420_s14 = scalar_lea.vmem %s1549_s2, %s1242_s8  ;;  %s1425_s17 = scalar_lea.vmem %s1550_s3, %s1242_s8 }
  0x16   : > { %s1085_s18 = sshll.u32 %s344_s11, 1  ;;  %s374_s26 = sadd.s32 %s1090_s10, %s344_s11 }
  0x17   : > { %s1435_s27 = scalar_lea.vmem %s1537_s1, %s1085_s18  ;;  %s1091_s12 = sshll.u32 %s374_s26, 1 }
  0x18   : > { %s1092_s13 = sshll.u32 %s1564_s22, 1  ;;  %s1440_s15 = scalar_lea.vmem %s1541_s5, %s1091_s12 }
  0x19   : > { %s1445_s3 = scalar_lea.vmem %s1542_s6, %s1092_s13  ;;  %388 = sbr.rel (%p1093_p7) target bundleno = 32 (0x20), region = 44 }
  0x20 PF: > { %v405_v1 = vld [vmem:[%s1425_s17] sm:$0xff]  ;;  %v406_v2 = vld [vmem:[%s1425_s17 + $0x8] sm:$0xff]  ;;  %v1340_v4 = vmov 0.0|0.0   ;;  %v407_v7 = vld [vmem:[%s1425_s17 + $0x10] sm:$0xff]  ;;  %vm1341_vm1 = vmmov 0   ;;  %v1342_v12 = vmov 0.0   ;;  %v898_v20 = vstv %s1413_s7 }
  0x21   : > { %v393_v3 = vld [vmem:[%s1420_s14] sm:$0xff]  ;;  %1206 = vmatprep.subr.bf16.mxu0 %v1340_v4  ;;  %1212 = vmatprep.subr.bf16.mxu1 %v1340_v4  ;;  %v1207_v5 = vpack.c.bf16 %v406_v2, %v405_v1  ;;  %v394_v6 = vld [vmem:[%s1420_s14 + $0x8] sm:$0xff]  ;;  %v408_v8 = vld [vmem:[%s1425_s17 + $0x18] sm:$0xff]  ;;  %v1343_v14 = vmov 0   ;;  %vm421_vm2 = vcmask 261120   ;;  %vm906_vm5 = vcmask 254976  }
  0x22   : > { %v1213_v9 = vpack.c.bf16 %v394_v6, %v393_v3  ;;  %v395_v10 = vld [vmem:[%s1420_s14 + $0x10] sm:$0xff]  ;;  %v396_v11 = vld [vmem:[%s1420_s14 + $0x18] sm:$0xff]  ;;  %1148 = vmatprep.mubr.msk.f32.mxu0 %vm1341_vm1, %v1342_v12  ;;  %1159 = vmatprep.mubr.msk.f32.mxu1 %vm1341_vm1, %v1342_v12  ;;  %v1210_v13 = vpack.c.bf16 %v408_v8, %v407_v7  ;;  %v409_v16 = vld [vmem:[%s1425_s17 + $0x20] sm:$0xff]  ;;  %p1107_p8 = scmp.ne.s32.totalorder %s1321_s21, 7 }
  0x23   : > { %1208 = vmatpush3.bf16.msra.mxu0 %v1207_v5  ;;  %1288 = vset.pattern.permute.xlu0 %v1343_v14  ;;  %v1216_v15 = vpack.c.bf16 %v396_v11, %v395_v10  ;;  %v410_v17 = vld [vmem:[%s1425_s17 + $0x28] sm:$0xff]  ;;  %v397_v18 = vld [vmem:[%s1420_s14 + $0x20] sm:$0xff]  ;;  %v411_v25 = vld [vmem:[%s1425_s17 + $0x30] sm:$0xff] }
  0x24   : > { %1214 = vmatpush3.bf16.msra.mxu1 %v1213_v9  ;;  %1209 = vmatprep.subr.bf16.mxu0 %v1340_v4  ;;  %v398_v19 = vld [vmem:[%s1420_s14 + $0x28] sm:$0xff]  ;;  %v1469_v21 = vld [vmem:[#allocation2] sm:$0x3]  ;;  %v1219_v23 = vpack.c.bf16 %v410_v17, %v409_v16  ;;  %v412_v26 = vld [vmem:[%s1425_s17 + $0x38] sm:$0xff] }
  0x25   : > { %1215 = vmatprep.subr.bf16.mxu1 %v1340_v4  ;;  %v392_v22 = vld [vmem:[%s1435_s27] sm:$0x3]  ;;  %v1225_v24 = vpack.c.bf16 %v398_v19, %v397_v18  ;;  %v399_v28 = vld [vmem:[%s1420_s14 + $0x30] sm:$0xff]  ;;  %v400_v29 = vld [vmem:[%s1420_s14 + $0x38] sm:$0xff]  ;;  %v1222_v30 = vpack.c.bf16 %v412_v26, %v411_v25 }
  0x26   : > { %v897_v27 = vld [vmem:[%s1536_s0] sm:$0x3]  ;;  %v1228_v32 = vpack.c.bf16 %v400_v29, %v399_v28  ;;  %v402_v34 = vld [vmem:[%s1420_s14 + $0x48] sm:$0xff]  ;;  %v403_v39 = vld [vmem:[%s1420_s14 + $0x50] sm:$0xff] }
  0x27   : > { %1211 = vmatpush3.bf16.msra.mxu0 %v1210_v13  ;;  %vm899_vm3 = vcmp.gt.s32.totalorder %v897_v27, %v898_v20  ;;  %v401_v33 = vld [vmem:[%s1420_s14 + $0x40] sm:$0xff]  ;;  %v414_v36 = vld [vmem:[%s1425_s17 + $0x48] sm:$0xff]  ;;  %v404_v40 = vld [vmem:[%s1420_s14 + $0x58] sm:$0xff] }
  0x28   : > { %1217 = vmatpush3.bf16.msra.mxu1 %v1216_v15  ;;  %1218 = vmatprep.subr.bf16.mxu0 %v1340_v4  ;;  %v900_v31 = vsel %vm899_vm3, 1, %v1343_v14  ;;  %v413_v35 = vld [vmem:[%s1425_s17 + $0x40] sm:$0xff]  ;;  %v1231_v37 = vpack.c.bf16 %v402_v34, %v401_v33  ;;  %v415_v41 = vld [vmem:[%s1425_s17 + $0x50] sm:$0xff]  ;;  %v416_v42 = vld [vmem:[%s1425_s17 + $0x58] sm:$0xff]  ;;  %v1234_v43 = vpack.c.bf16 %v404_v40, %v403_v39 }
  0x29   : > { %1224 = vmatprep.subr.bf16.mxu1 %v1340_v4  ;;  %902 = vperm.xlu0 %1288, %v900_v31   ;;  %v1237_v38 = vpack.c.bf16 %v414_v36, %v413_v35  ;;  %v1240_v44 = vpack.c.bf16 %v416_v42, %v415_v41  ;;  %v1096_v46 = vld [vmem:[%s1430_s28] ss:$0 sm:$0xff]  ;;  %v1100_v54 = vld [vmem:[%s1430_s28 + $0x1] ss:$0 sm:$0xff]  ;;  %v1104_v3 = vld [vmem:[%s1430_s28 + $0x3] ss:$0 sm:$0xff] }
  0x2a   : > { %1149 = vmatmul.mubr.msk.f32.vlgmr.msra.gmra.mrb[0].mxu0 %vm421_vm2, %v1469_v21  ;;  %v1102_v6 = vld [vmem:[%s1430_s28 + $0x2] ss:$0 sm:$0xff] }
  0x2b   : > { %1160 = vmatmul.mubr.msk.f32.vlgmr.msra.gmra.mrb[0].mxu1 %vm421_vm2, %v392_v22  ;;  %1220 = vmatpush3.bf16.msra.mxu0 %v1219_v23 }
  0x2c   : > { %1226 = vmatpush3.bf16.msra.mxu1 %v1225_v24  ;;  %1221 = vmatprep.subr.bf16.mxu0 %v1340_v4 }
  0x2d   : > { %1227 = vmatprep.subr.bf16.mxu1 %v1340_v4  ;;  %1170 = vmatprep.mubr.msk.f32.mxu0 %vm1341_vm1, %v1342_v12 }
  0x2e   : > { %1181 = vmatprep.mubr.msk.f32.mxu1 %vm1341_vm1, %v1342_v12 }
  0x2f   : > { %1223 = vmatpush3.bf16.msra.mxu0 %v1222_v30 }
  0x30   : > { %1229 = vmatpush3.bf16.msra.mxu1 %v1228_v32  ;;  %1230 = vmatprep.subr.bf16.mxu0 %v1340_v4 }
  0x31   : > { %1236 = vmatprep.subr.bf16.mxu1 %v1340_v4 }
  0x32   : > { %1171 = vmatmul.mubr.msk.f32.vlgmr.msra.gmra.mrb[2].mxu0 %vm421_vm2, %v1469_v21 }
  0x33   : > { %1182 = vmatmul.mubr.msk.f32.vlgmr.msra.gmra.mrb[2].mxu1 %vm421_vm2, %v392_v22  ;;  %1232 = vmatpush3.bf16.msra.mxu0 %v1231_v37 }
  0x34   : > { %1238 = vmatpush3.bf16.msra.mxu1 %v1237_v38  ;;  %1233 = vmatprep.subr.bf16.mxu0 %v1340_v4 }
  0x35   : > { %1239 = vmatprep.subr.bf16.mxu1 %v1340_v4  ;;  %1203 = vmatprep.mubr.msk.f32.mxu1 %vm1341_vm1, %v1342_v12 }
  0x36   : > { %1192 = vmatprep.mubr.msk.f32.mxu0 %vm1341_vm1, %v1342_v12 }
  0x37   : > { %1235 = vmatpush3.bf16.msra.mxu0 %v1234_v43 }
  0x38   : > { %1241 = vmatpush3.bf16.msra.mxu1 %v1240_v44 }
  0x3a   : > { %1193 = vmatmul.mubr.msk.f32.vlgmr.msra.gmra.mrb[4].mxu0 %vm421_vm2, %v392_v22 }
  0x3b   : > { %1204 = vmatmul.mubr.msk.f32.vlgmr.msra.gmra.mrb[4].mxu1 %vm421_vm2, %v1469_v21 }
  0xa8   : > { %v903_v14 = vpop.permute.xlu0 %902 }
  0xa9   : > { %vm904_vm4 = vcmp.eq.s32.totalorder %v903_v14, 1 }
  0xfd   : > { %v491_v45 = vpop.f32.mrb[0].mxu0 }
  0xfe   : > { %v564_v47 = vpop.f32.mrb[0].mxu1  ;;  %v1150_v48 = vpop.f32.mrb[1].mxu0 }
  0xff   : > { %v565_v49 = vadd.f32 %v564_v47, %v491_v45  ;;  %v1161_v50 = vpop.f32.mrb[1].mxu1 }
 0x101   : > { %v574_v51 = vadd.f32 %v1096_v46, %v565_v49 }
 0x103   : > { %v1097_v52 = vmul.f32 -1.442695, %v574_v51 }
 0x105   : > { %1289 = vpow2.f32 %v1097_v52  ;;  %v647_v53 = vpop.f32.mrb[2].mxu0 }
 0x106   : > { %v717_v55 = vpop.f32.mrb[2].mxu1  ;;  %v1172_v56 = vpop.f32.mrb[3].mxu0 }
 0x107   : > { %v718_v57 = vadd.f32 %v717_v55, %v647_v53  ;;  %v1183_v58 = vpop.f32.mrb[3].mxu1 }
 0x109   : > { %v727_v59 = vadd.f32 %v1100_v54, %v718_v57 }
 0x10b   : > { %v1101_v60 = vmul.f32 -1.442695, %v727_v59 }
 0x10d   : > { %1291 = vpow2.f32 %v1101_v60  ;;  %v806_v61 = vpop.f32.mrb[4].mxu0 }
 0x10e   : > { %v882_v62 = vpop.f32.mrb[4].mxu1  ;;  %v1194_v63 = vpop.f32.mrb[5].mxu0  ;;  %v807_v8 = vadd.f32 %v1102_v6, %v806_v61 }
 0x10f   : > { %v1290_v0 = vpop.eup %1289  ;;  %v1205_v1 = vpop.f32.mrb[5].mxu1  ;;  %v883_v7 = vadd.f32 %v1104_v3, %v882_v62 }
 0x110   : > { %v578_v2 = vadd.f32 1.0, %v1290_v0 }
 0x112   : > { %1293 = vrcp.f32 %v578_v2 }
 0x117   : > { %v1292_v4 = vpop.eup %1291 }
 0x118   : > { %v731_v5 = vadd.f32 1.0, %v1292_v4 }
 0x11a   : > { %1295 = vrcp.f32 %v731_v5 }
 0x11c   : > { %v1294_v9 = vpop.eup %1293 }
 0x11d   : > { %v886_v10 = vmul.f32 %v1294_v9, %v883_v7 }
 0x11f   : > { %v887_v11 = vadd.f32 %v886_v10, %v807_v8 }
 0x121   : > { %1297 = vtanh.f32 %v887_v11 }
 0x124   : > { %v1296_v12 = vpop.eup %1295 }
 0x125   : > { %v889_v13 = vsub.f32 1.0, %v1296_v12  ;;  %v891_v17 = vmul.f32 %v1296_v12, %v1469_v21 }
 0x12b   : > { %v1298_v15 = vpop.eup %1297  ;;  %913 = sbr.rel (%p1107_p8) target bundleno = 307 (0x133), region = 48 }
 0x12c   : > { %v890_v16 = vmul.f32 %v1298_v15, %v889_v13 }
 0x12e   : > { %v892_v18 = vadd.f32 %v891_v17, %v890_v16 }
 0x130   : > { %v905_v19 = vsel %vm904_vm4, %v892_v18, %v1469_v21  ;;  %v908_v20 = vsel %vm904_vm4, %v892_v18, 0.0 }
 0x131   : > { %907 = vst.msk [vmem:[#allocation2] sm:$0x3] %vm906_vm5, %v905_v19  ;;  %909 = vst.msk [vmem:[%s1440_s15] sm:$0x3] %vm906_vm5, %v908_v20 }
 0x132   : > { %914 = vst.msk [vmem:[%s1445_s3] sm:$0x3] %vm906_vm5, %v905_v19 }
 0x133 PF: > { %s17_s25 = sadd.s32 1, %s1337_s25   ;;  %s1551_s22 = sld [smem:[#allocation3_spill]] }
 0x134   : > { %p14_p9 = scmp.ge.s32.totalorder %s17_s25, 18   ;;  %s1552_s24 = sld [smem:[#allocation4_spill]] }
 0x135   : > { %s1553_s26 = sld [smem:[#allocation5_spill]]  ;;  %s1554_s21 = smov %s1329_s23 }
 0x136   :  { %16 = sbr.rel (!%p14_p9) target bundleno = 4 (0x4), region = 99 }
 0x13a   : > { %s1555_s23 = smov %s1552_s24 }
 0x13b   : > { %s1556_s24 = smov %s1553_s26 }

// kernel: seq2seq_forward.5
= control target key start
LH: loop header
LB: loop body
LE: loop exit
PB: predicated region body
PF: predicated region fallthrough
CT: control target
= control target key end

     0   :  { %s3400_s0 = inlined_call_operand.vmem [shape: f32[8,2,32], index: 0, kind: input, shape index: {}]   ;;  %s3401_s1 = inlined_call_operand.vmem [shape: s32[8,2,1], index: 1, kind: input, shape index: {}]   ;;  %s3402_s2 = inlined_call_operand.vmem [shape: s32[2,1], index: 2, kind: input, shape index: {}]   ;;  %s3403_s3 = inlined_call_operand.vmem [shape: f32[2,8,32], index: 3, kind: input, shape index: {}]   ;;  %s3404_s4 = inlined_call_operand.vmem [shape: f32[2,32], index: 4, kind: input, shape index: {}]   ;;  %s3405_s5 = inlined_call_operand.vmem [shape: f32[2,32], index: 5, kind: input, shape index: {}]   ;;  %s3406_s6 = inlined_call_operand.vmem [shape: f32[3,32,32], index: 6, kind: input, shape index: {}]   ;;  %s3407_s7 = inlined_call_operand.vmem [shape: f32[3,32,32], index: 7, kind: input, shape index: {}]   ;;  %s3408_s8 = inlined_call_operand.vmem [shape: f32[4,1,32], index: 8, kind: input, shape index: {}]   ;;  %s3409_s9 = inlined_call_operand.vmem [shape: f32[3,32,32], index: 9, kind: input, shape index: {}]   ;;  %s3410_s10 = inlined_call_operand.vmem [shape: f32[3,32,32], index: 10, kind: input, shape index: {}]   ;;  %s3411_s11 = inlined_call_operand.vmem [shape: f32[4,1,32], index: 11, kind: input, shape index: {}]   ;;  %s3412_s12 = inlined_call_operand.vmem [shape: f32[32,32], index: 12, kind: input, shape index: {}]   ;;  %s3413_s13 = inlined_call_operand.vmem [shape: f32[32,32], index: 13, kind: input, shape index: {}]   ;;  %s3414_s14 = inlined_call_operand.vmem [shape: f32[1,32], index: 14, kind: input, shape index: {}]   ;;  %s3415_s15 = inlined_call_operand.vmem [shape: f32[32,16], index: 15, kind: input, shape index: {}]   ;;  %s3416_s16 = inlined_call_operand.vmem [shape: f32[1,16], index: 16, kind: input, shape index: {}]   ;;  %s3417_s17 = inlined_call_operand.vmem [shape: f32[8,2,16], index: 17, kind: output, shape index: {0}]   ;;  %s3418_s18 = inlined_call_operand.hbm [shape: f32[1,1], index: 18, kind: output, shape index: {1}]  }
   0x1   :  { %3420 = sst [smem:[#allocation9_spill]] %s3400_s0 }
   0x2   :  { %3421 = sst [smem:[#allocation10_spill]] %s3401_s1 }
   0x3   :  { %3422 = sst [smem:[#allocation11_spill]] %s3402_s2 }
   0x4   :  { %24 = vsyncpa [#allocation6], 0  ;;  %s2977_s27 = smov 0  }
   0x5 LB: > { %3423 = sst [smem:[#allocation8_spill]] %s2873_s27  ;;  %s2983_s28 = sadd.s32 4294967295, %s2873_s27   ;;  %s2873_s27 = sphi %s2977_s27, %s30_s27  }
   0x6   : > { %p2371_p0 = scmp.ge.s32.totalorder %s2873_s27, 1  ;;  %p519_p1 = scmp.lt.s32.totalorder %s2873_s27, 9 }
   0x8   : > { %p520_p2 = pnand %p2371_p0, %p519_p1 }
   0x9   : > { %p575_p3 = scmp.lt.s32.totalorder (!%p520_p2), %s2983_s28, 7  ;;  %s3424_s1 = sld [smem:[#allocation9_spill]] (!%p520_p2) }
   0xa   : > { %523 = sbr.rel (%p520_p2) target bundleno = 2464 (0x9a0), region = 88  ;;  %s3425_s2 = sld [smem:[#allocation10_spill]] (!%p520_p2) }
   0xb   : > { %p2375_p4 = scmp.ne.s32.totalorder (!%p520_p2), %s2983_s28, 0 }
  0x11   : > { %s576_s29 = scalar_select %p575_p3, %s2983_s28, 7 }
  0x12   : > { %590 = sbr.rel (%p2375_p4) target bundleno = 25 (0x19), region = 92  ;;  %v591_v0 = vld [vmem:[%s3404_s4] sm:$0x3] (!%p2375_p4)  ;;  %vm592_vm0 = vcmask (!%p2375_p4), 254976   ;;  %vm596_vm1 = vcmask (!%p2375_p4), 0   ;;  %v2875_v2 = vmov (!%p2375_p4), 0.0  }
  0x13   : > { %s2989_s30 = sshll.u32 %s576_s29, 1  ;;  %v594_v1 = vld [vmem:[%s3405_s5] sm:$0x3] (!%p2375_p4)  ;;  %593 = vst.msk [vmem:[#allocation2] sm:$0x3] (!%p2375_p4), %vm592_vm0, %v591_v0 }
  0x14   : > { %s578_s20 = scalar_lea.vmem %s3424_s1, %s2989_s30  ;;  %s582_s23 = scalar_lea.vmem %s3425_s2, %s2989_s30  ;;  %595 = vst.msk [vmem:[#allocation3] sm:$0x3] (!%p2375_p4), %vm592_vm0, %v594_v1 }
  0x15   : > { %s586_s26 = scalar_lea.vmem %s3417_s17, %s2989_s30  ;;  %597 = vst.msk [vmem:[#allocation4] sm:$0x1] (!%p2375_p4), %vm596_vm1, %v2875_v2 }
  0x19 PF: > { %v612_v3 = vld [vmem:[%s3407_s7] sm:$0xff]  ;;  %v613_v4 = vld [vmem:[%s3407_s7 + $0x8] sm:$0xff]  ;;  %v2876_v6 = vmov 0.0|0.0   ;;  %v614_v9 = vld [vmem:[%s3407_s7 + $0x10] sm:$0xff]  ;;  %vm2877_vm2 = vmmov 0   ;;  %v2878_v14 = vmov 0.0  }
  0x1a   : > { %v600_v5 = vld [vmem:[%s3406_s6] sm:$0xff]  ;;  %2685 = vmatprep.subr.bf16.mxu0 %v2876_v6  ;;  %2691 = vmatprep.subr.bf16.mxu1 %v2876_v6  ;;  %v2686_v7 = vpack.c.bf16 %v613_v4, %v612_v3  ;;  %v601_v8 = vld [vmem:[%s3406_s6 + $0x8] sm:$0xff]  ;;  %v615_v10 = vld [vmem:[%s3407_s7 + $0x18] sm:$0xff]  ;;  %vm628_vm3 = vcmask 261120   ;;  %vm1600_vm4 = vcmask 254976   ;;  %vm1778_vm5 = vcmask 57344  }
  0x1b   : > { %v2692_v11 = vpack.c.bf16 %v601_v8, %v600_v5  ;;  %v602_v12 = vld [vmem:[%s3406_s6 + $0x10] sm:$0xff]  ;;  %v603_v13 = vld [vmem:[%s3406_s6 + $0x18] sm:$0xff]  ;;  %2508 = vmatprep.mubr.msk.f32.mxu0 %vm2877_vm2, %v2878_v14  ;;  %2519 = vmatprep.mubr.msk.f32.mxu1 %vm2877_vm2, %v2878_v14  ;;  %v2689_v15 = vpack.c.bf16 %v615_v10, %v614_v9  ;;  %v616_v17 = vld [vmem:[%s3407_s7 + $0x20] sm:$0xff]  ;;  %vm1801_vm6 = vcmask 64512   ;;  %vm1959_vm7 = vcmask 1041409   ;;  %p2412_p5 = scmp.ne.s32.totalorder %s2983_s28, 7 }
  0x1c   : > { %2687 = vmatpush3.bf16.msra.mxu0 %v2686_v7  ;;  %v2695_v16 = vpack.c.bf16 %v603_v13, %v602_v12  ;;  %v617_v18 = vld [vmem:[%s3407_s7 + $0x28] sm:$0xff]  ;;  %v604_v19 = vld [vmem:[%s3406_s6 + $0x20] sm:$0xff]  ;;  %v618_v25 = vld [vmem:[%s3407_s7 + $0x30] sm:$0xff]  ;;  %vm2198_vm8 = vcmask 123904   ;;  %vm2232_vm11 = vcmask 1024   ;;  %vm2245_vm12 = vcmask 0  }
  0x1d   : > { %2693 = vmatpush3.bf16.msra.mxu1 %v2692_v11  ;;  %2688 = vmatprep.subr.bf16.mxu0 %v2876_v6  ;;  %v605_v20 = vld [vmem:[%s3406_s6 + $0x28] sm:$0xff]  ;;  %v3054_v21 = vld [vmem:[#allocation2] sm:$0x3]  ;;  %v2698_v22 = vpack.c.bf16 %v617_v18, %v616_v17  ;;  %v619_v26 = vld [vmem:[%s3407_s7 + $0x38] sm:$0xff]  ;;  %s3429_s27 = sld [smem:[#allocation11_spill]] (!%p2412_p5) }
  0x1e   : > { %2694 = vmatprep.subr.bf16.mxu1 %v2876_v6  ;;  %v598_v23 = vld [vmem:[%s578_s20] sm:$0x3]  ;;  %v2704_v24 = vpack.c.bf16 %v605_v20, %v604_v19  ;;  %v606_v27 = vld [vmem:[%s3406_s6 + $0x30] sm:$0xff]  ;;  %v607_v28 = vld [vmem:[%s3406_s6 + $0x38] sm:$0xff]  ;;  %v2701_v29 = vpack.c.bf16 %v619_v26, %v618_v25 }
  0x1f   : > { %v2707_v30 = vpack.c.bf16 %v607_v28, %v606_v27  ;;  %v608_v31 = vld [vmem:[%s3406_s6 + $0x40] sm:$0xff]  ;;  %v609_v32 = vld [vmem:[%s3406_s6 + $0x48] sm:$0xff]  ;;  %v610_v37 = vld [vmem:[%s3406_s6 + $0x50] sm:$0xff] }
  0x20   : > { %2690 = vmatpush3.bf16.msra.mxu0 %v2689_v15  ;;  %v620_v33 = vld [vmem:[%s3407_s7 + $0x40] sm:$0xff]  ;;  %v621_v34 = vld [vmem:[%s3407_s7 + $0x48] sm:$0xff]  ;;  %v2710_v35 = vpack.c.bf16 %v609_v32, %v608_v31  ;;  %v611_v38 = vld [vmem:[%s3406_s6 + $0x58] sm:$0xff] }
  0x21   : > { %2696 = vmatpush3.bf16.msra.mxu1 %v2695_v16  ;;  %2697 = vmatprep.subr.bf16.mxu0 %v2876_v6  ;;  %v2716_v36 = vpack.c.bf16 %v621_v34, %v620_v33  ;;  %v622_v39 = vld [vmem:[%s3407_s7 + $0x50] sm:$0xff]  ;;  %v623_v40 = vld [vmem:[%s3407_s7 + $0x58] sm:$0xff]  ;;  %v2713_v41 = vpack.c.bf16 %v611_v38, %v610_v37  ;;  %v1113_v43 = vld [vmem:[%s3410_s10] sm:$0xff] }
  0x22   : > { %2703 = vmatprep.subr.bf16.mxu1 %v2876_v6  ;;  %v2719_v42 = vpack.c.bf16 %v623_v40, %v622_v39  ;;  %v1114_v44 = vld [vmem:[%s3410_s10 + $0x8] sm:$0xff]  ;;  %v1115_v46 = vld [vmem:[%s3410_s10 + $0x10] sm:$0xff]  ;;  %v1116_v47 = vld [vmem:[%s3410_s10 + $0x18] sm:$0xff] }
  0x23   : > { %2509 = vmatmul.mubr.msk.f32.vlgmr.msra.gmra.mrb[0].mxu0 %vm628_vm3, %v3054_v21  ;;  %v2722_v45 = vpack.c.bf16 %v1114_v44, %v1113_v43  ;;  %v2725_v48 = vpack.c.bf16 %v1116_v47, %v1115_v46  ;;  %v1117_v49 = vld [vmem:[%s3410_s10 + $0x20] sm:$0xff]  ;;  %v1118_v50 = vld [vmem:[%s3410_s10 + $0x28] sm:$0xff]  ;;  %v1119_v53 = vld [vmem:[%s3410_s10 + $0x30] sm:$0xff] }
  0x24   : > { %2520 = vmatmul.mubr.msk.f32.vlgmr.msra.gmra.mrb[0].mxu1 %vm628_vm3, %v598_v23  ;;  %2699 = vmatpush3.bf16.msra.mxu0 %v2698_v22  ;;  %v2734_v51 = vpack.c.bf16 %v1118_v50, %v1117_v49  ;;  %v3148_v52 = vld [vmem:[#allocation3] sm:$0x3]  ;;  %v1120_v54 = vld [vmem:[%s3410_s10 + $0x38] sm:$0xff]  ;;  %v1102_v57 = vld [vmem:[%s3409_s9 + $0x8] sm:$0xff] }
  0x25   : > { %2705 = vmatpush3.bf16.msra.mxu1 %v2704_v24  ;;  %2700 = vmatprep.subr.bf16.mxu0 %v2876_v6  ;;  %v1101_v55 = vld [vmem:[%s3409_s9] sm:$0xff]  ;;  %v2737_v56 = vpack.c.bf16 %v1120_v54, %v1119_v53  ;;  %v1110_v60 = vld [vmem:[%s3409_s9 + $0x48] sm:$0xff]  ;;  %v1103_v61 = vld [vmem:[%s3409_s9 + $0x10] sm:$0xff] }
  0x26   : > { %2706 = vmatprep.subr.bf16.mxu1 %v2876_v6  ;;  %2530 = vmatprep.mubr.msk.f32.mxu0 %vm2877_vm2, %v2878_v14  ;;  %v1109_v58 = vld [vmem:[%s3409_s9 + $0x40] sm:$0xff]  ;;  %v2728_v59 = vpack.c.bf16 %v1102_v57, %v1101_v55  ;;  %v1104_v62 = vld [vmem:[%s3409_s9 + $0x18] sm:$0xff]  ;;  %v1111_v1 = vld [vmem:[%s3409_s9 + $0x50] sm:$0xff] }
  0x27   : > { %2541 = vmatprep.mubr.msk.f32.mxu1 %vm2877_vm2, %v2878_v14  ;;  %v2731_v63 = vpack.c.bf16 %v1104_v62, %v1103_v61  ;;  %v2746_v0 = vpack.c.bf16 %v1110_v60, %v1109_v58  ;;  %v1112_v2 = vld [vmem:[%s3409_s9 + $0x58] sm:$0xff]  ;;  %v2378_v5 = vld [vmem:[%s3408_s8] ss:$0 sm:$0xff]  ;;  %v2382_v15 = vld [vmem:[%s3408_s8 + $0x1] ss:$0 sm:$0xff] }
  0x28   : > { %2702 = vmatpush3.bf16.msra.mxu0 %v2701_v29  ;;  %v2749_v3 = vpack.c.bf16 %v1112_v2, %v1111_v1  ;;  %v2386_v29 = vld [vmem:[%s3408_s8 + $0x3] ss:$0 sm:$0xff]  ;;  %v2384_v32 = vld [vmem:[%s3408_s8 + $0x2] ss:$0 sm:$0xff]  ;;  %v1107_v47 = vld [vmem:[%s3409_s9 + $0x30] sm:$0xff] }
  0x29   : > { %2708 = vmatpush3.bf16.msra.mxu1 %v2707_v30  ;;  %2709 = vmatprep.subr.bf16.mxu0 %v2876_v6  ;;  %v1105_v40 = vld [vmem:[%s3409_s9 + $0x20] sm:$0xff]  ;;  %v1122_v50 = vld [vmem:[%s3410_s10 + $0x48] sm:$0xff]  ;;  %v1123_v53 = vld [vmem:[%s3410_s10 + $0x50] sm:$0xff] }
  0x2a   : > { %2715 = vmatprep.subr.bf16.mxu1 %v2876_v6  ;;  %v1124_v54 = vld [vmem:[%s3410_s10 + $0x58] sm:$0xff]  ;;  %v1603_v60 = vld [vmem:[%s3403_s3] sm:$0xff] }
  0x2b   : > { %2531 = vmatmul.mubr.msk.f32.vlgmr.msra.gmra.mrb[2].mxu0 %vm628_vm3, %v3054_v21  ;;  %v2755_v55 = vpack.c.bf16 %v1124_v54, %v1123_v53  ;;  %v2390_v61 = vld [vmem:[%s3411_s11] ss:$0 sm:$0xff] }
  0x2c   : > { %2542 = vmatmul.mubr.msk.f32.vlgmr.msra.gmra.mrb[2].mxu1 %vm628_vm3, %v598_v23  ;;  %2711 = vmatpush3.bf16.msra.mxu0 %v2710_v35 }
  0x2d   : > { %2717 = vmatpush3.bf16.msra.mxu1 %v2716_v36  ;;  %2712 = vmatprep.subr.bf16.mxu0 %v2876_v6 }
  0x2e   : > { %2718 = vmatprep.subr.bf16.mxu1 %v2876_v6  ;;  %2563 = vmatprep.mubr.msk.f32.mxu1 %vm2877_vm2, %v2878_v14 }
  0x2f   : > { %2552 = vmatprep.mubr.msk.f32.mxu0 %vm2877_vm2, %v2878_v14 }
  0x30   : > { %2714 = vmatpush3.bf16.msra.mxu0 %v2713_v41  ;;  %v1106_v41 = vld [vmem:[%s3409_s9 + $0x28] sm:$0xff] }
  0x31   : > { %2720 = vmatpush3.bf16.msra.mxu1 %v2719_v42  ;;  %2721 = vmatprep.subr.bf16.mxu0 %v2876_v6 }
  0x32   : > { %2727 = vmatprep.subr.bf16.mxu1 %v2876_v6 }
  0x33   : > { %2553 = vmatmul.mubr.msk.f32.vlgmr.msra.gmra.mrb[4].mxu0 %vm628_vm3, %v598_v23 }
  0x34   : > { %2564 = vmatmul.mubr.msk.f32.vlgmr.msra.gmra.mrb[4].mxu1 %vm628_vm3, %v3054_v21  ;;  %2574 = vmatprep.mubr.msk.f32.mxu0 %vm2877_vm2, %v2878_v14 }
  0x35   : > { %2585 = vmatprep.mubr.msk.f32.mxu1 %vm2877_vm2, %v2878_v14  ;;  %2723 = vmatpush3.bf16.msra.mxu0 %v2722_v45  ;;  %v2740_v45 = vpack.c.bf16 %v1106_v41, %v1105_v40  ;;  %v1604_v41 = vld [vmem:[%s3403_s3 + $0x8] sm:$0xff] }
  0x36   : > { %2724 = vmatprep.subr.bf16.mxu0 %v2876_v6  ;;  %2729 = vmatpush3.bf16.msra.mxu1 %v2728_v59 }
  0x37   : > { %2730 = vmatprep.subr.bf16.mxu1 %v2876_v6 }
  0x39   : > { %2726 = vmatpush3.bf16.msra.mxu0 %v2725_v48  ;;  %v1108_v48 = vld [vmem:[%s3409_s9 + $0x38] sm:$0xff] }
  0x3a   : > { %2733 = vmatprep.subr.bf16.mxu0 %v2876_v6  ;;  %2732 = vmatpush3.bf16.msra.mxu1 %v2731_v63  ;;  %v2743_v49 = vpack.c.bf16 %v1108_v48, %v1107_v47 }
  0x3b   : > { %2739 = vmatprep.subr.bf16.mxu1 %v2876_v6 }
  0x3c   : > { %2575 = vmatmul.mubr.msk.f32.vlgmr.msra.gmra.mrb[6].mxu0 %vm628_vm3, %v3148_v52 }
  0x3d   : > { %2735 = vmatpush3.bf16.msra.mxu0 %v2734_v51  ;;  %2596 = vmatprep.mubr.msk.f32.mxu0 %vm2877_vm2, %v2878_v14 }
  0x3e   : > { %2736 = vmatprep.subr.bf16.mxu0 %v2876_v6 }
  0x41   : > { %2738 = vmatpush3.bf16.msra.mxu0 %v2737_v56 }
  0x42   : > { %2745 = vmatprep.subr.bf16.mxu0 %v2876_v6 }
  0x44   : > { %2597 = vmatmul.mubr.msk.f32.vlgmr.msra.gmra.mrb[8].mxu0 %vm628_vm3, %v3148_v52 }
  0x45   : > { %2747 = vmatpush3.bf16.msra.mxu0 %v2746_v0  ;;  %2618 = vmatprep.mubr.msk.f32.mxu0 %vm2877_vm2, %v2878_v14 }
  0x46   : > { %2748 = vmatprep.subr.bf16.mxu0 %v2876_v6 }
  0x49   : > { %2750 = vmatpush3.bf16.msra.mxu0 %v2749_v3 }
  0x4a   : > { %2642 = vmatprep.subr.mxu0 %v2878_v14 }
  0xf6   : > { %v698_v4 = vpop.f32.mrb[0].mxu0 }
  0xf7   : > { %v771_v7 = vpop.f32.mrb[0].mxu1  ;;  %v2510_v8 = vpop.f32.mrb[1].mxu0 }
  0xf8   : > { %v772_v9 = vadd.f32 %v771_v7, %v698_v4  ;;  %v2521_v10 = vpop.f32.mrb[1].mxu1 }
  0xfa   : > { %v781_v11 = vadd.f32 %v2378_v5, %v772_v9  ;;  %v2394_v5 = vld [vmem:[%s3411_s11 + $0x1] ss:$0 sm:$0xff] }
  0xfc   : > { %v2379_v12 = vmul.f32 -1.442695, %v781_v11 }
  0xfe   : > { %2801 = vpow2.f32 %v2379_v12  ;;  %v854_v13 = vpop.f32.mrb[2].mxu0 }
  0xff   : > { %v924_v16 = vpop.f32.mrb[2].mxu1  ;;  %v2532_v17 = vpop.f32.mrb[3].mxu0 }
 0x100   : > { %v925_v18 = vadd.f32 %v924_v16, %v854_v13  ;;  %v2543_v19 = vpop.f32.mrb[3].mxu1  ;;  %v2398_v17 = vld [vmem:[%s3411_s11 + $0x3] ss:$0 sm:$0xff] }
 0x102   : > { %v934_v20 = vadd.f32 %v2382_v15, %v925_v18 }
 0x104   : > { %v2383_v22 = vmul.f32 -1.442695, %v934_v20 }
 0x106   : > { %2803 = vpow2.f32 %v2383_v22  ;;  %v1013_v23 = vpop.f32.mrb[4].mxu0  ;;  %v2396_v22 = vld [vmem:[%s3411_s11 + $0x2] ss:$0 sm:$0xff] }
 0x107   : > { %v1089_v24 = vpop.f32.mrb[4].mxu1  ;;  %v2554_v25 = vpop.f32.mrb[5].mxu0  ;;  %v1014_v34 = vadd.f32 %v2384_v32, %v1013_v23 }
 0x108   : > { %v2802_v26 = vpop.eup %2801  ;;  %v2565_v27 = vpop.f32.mrb[5].mxu1  ;;  %v1090_v33 = vadd.f32 %v2386_v29, %v1089_v24  ;;  %v1609_v29 = vlaneseq }
 0x109   : > { %v785_v28 = vadd.f32 1.0, %v2802_v26  ;;  %v2879_v27 = vmov 1966171168  }
 0x10a   : > { %v1610_v32 = vshrl.u32 %v1609_v29, 7 }
 0x10b   : > { %2805 = vrcp.f32 %v785_v28  ;;  %v1607_v28 = vunpack.c.l.s4 %v2879_v27 }
 0x10f   : > { %v1198_v56 = vpop.f32.mrb[6].mxu0 }
 0x110   : > { %v2804_v30 = vpop.eup %2803  ;;  %v2576_v57 = vpop.f32.mrb[7].mxu0 }
 0x111   : > { %v938_v31 = vadd.f32 1.0, %v2804_v30 }
 0x113   : > { %2807 = vrcp.f32 %v938_v31  ;;  %v1608_v31 = vunpack.c.0.s8 %v1607_v28  ;;  %v2117_v28 = vld [vmem:[%s3415_s15 + $0x18] sm:$0xff] }
 0x115   : > { %v2806_v35 = vpop.eup %2805 }
 0x116   : > { %v1093_v36 = vmul.f32 %v2806_v35, %v1090_v33 }
 0x117   : > { %v1354_v58 = vpop.f32.mrb[8].mxu0 }
 0x118   : > { %v1094_v37 = vadd.f32 %v1093_v36, %v1014_v34  ;;  %v2598_v59 = vpop.f32.mrb[9].mxu0 }
 0x11a   : > { %2809 = vtanh.f32 %v1094_v37  ;;  %v1611_v37 = vsub.s32 %v1608_v31, %v1610_v32  ;;  %v2408_v32 = vld [vmem:[%s3414_s14] ss:$0 sm:$0xff] }
 0x11d   : > { %v2808_v38 = vpop.eup %2807 }
 0x11e   : > { %v1096_v39 = vsub.f32 1.0, %v2808_v38  ;;  %v1098_v44 = vmul.f32 %v2808_v38, %v3054_v21  ;;  %v1121_v21 = vld [vmem:[%s3410_s10 + $0x40] sm:$0xff] }
 0x11f   : > { %v2752_v51 = vpack.c.bf16 %v1122_v50, %v1121_v21 }
 0x124   : > { %v2810_v42 = vpop.eup %2809 }
 0x125   : > { %v1097_v43 = vmul.f32 %v2810_v42, %v1096_v39 }
 0x127   : > { %v1099_v46 = vadd.f32 %v1098_v44, %v1097_v43 }
 0x129   : > { %2586 = vmatmul.mubr.msk.f32.vlgmr.msra.gmra.mrb[6].mxu1 %vm628_vm3, %v1099_v46  ;;  %1601 = vst.msk [vmem:[#allocation2] sm:$0x3] %vm1600_vm4, %v1099_v46  ;;  %2619 = vmatmul.mubr.msk.f32.vlgmr.msra.gmra.mrb[10].mxu0 %vm628_vm3, %v1099_v46 }
 0x12a   : > { %2741 = vmatpush3.bf16.msra.mxu1 %v2740_v45  ;;  %2607 = vmatprep.mubr.msk.f32.mxu1 %vm2877_vm2, %v2878_v14 }
 0x12b   : > { %2742 = vmatprep.subr.bf16.mxu1 %v2876_v6  ;;  %2644 = vmatprep.mubr.msk.f32.mxu0 %vm2877_vm2, %v2878_v14 }
 0x12c   : > { %2643 = vmatpush3.msra.mxu0 %v1603_v60 }
 0x12d   : > { %2757 = vmatprep.subr.bf16.mxu0 %v2876_v6 }
 0x12e   : > { %2744 = vmatpush3.bf16.msra.mxu1 %v2743_v49 }
 0x12f   : > { %2751 = vmatprep.subr.bf16.mxu1 %v2876_v6 }
 0x131   : > { %2608 = vmatmul.mubr.msk.f32.vlgmr.msra.gmra.mrb[8].mxu1 %vm628_vm3, %v1099_v46 }
 0x132   : > { %2753 = vmatpush3.bf16.msra.mxu1 %v2752_v51  ;;  %2629 = vmatprep.mubr.msk.f32.mxu1 %vm2877_vm2, %v2878_v14 }
 0x133   : > { %2754 = vmatprep.subr.bf16.mxu1 %v2876_v6 }
 0x136   : > { %2756 = vmatpush3.bf16.msra.mxu1 %v2755_v55 }
 0x137   : > { %2632 = vmatprep.subr.mxu1 %v2878_v14 }
 0x139   : > { %2630 = vmatmul.mubr.msk.f32.vlgmr.msra.gmra.mrb[10].mxu1 %vm628_vm3, %v3148_v52 }
 0x13a   : > { %2634 = vmatprep.mubr.msk.f32.mxu1 %vm2877_vm2, %v2878_v14 }
 0x13f   : > { %2633 = vmatpush3.xpose.msk.msra.mxu1 %vm628_vm3, %v1603_v60 }
 0x140   : > { %2637 = vmatprep.subr.mxu1 %v2878_v14 }
 0x1fc   : > { %v1271_v62 = vpop.f32.mrb[6].mxu1  ;;  %v1513_v63 = vpop.f32.mrb[10].mxu0 }
 0x1fd   : > { %v1272_v0 = vadd.f32 %v1271_v62, %v1198_v56  ;;  %v2587_v1 = vpop.f32.mrb[7].mxu1  ;;  %v2620_v2 = vpop.f32.mrb[11].mxu0  ;;  %v1514_v24 = vadd.f32 %v2396_v22, %v1513_v63  ;;  %v1949_v62 = vld [vmem:[%s3412_s12 + $0x8] sm:$0xff] }
 0x1fe   : > { %v1950_v1 = vld [vmem:[%s3412_s12 + $0x10] sm:$0xff] }
 0x1ff   : > { %v1281_v3 = vadd.f32 %v2390_v61, %v1272_v0  ;;  %v1948_v61 = vld [vmem:[%s3412_s12] sm:$0xff] }
 0x200   : > { %v2764_v0 = vpack.c.bf16 %v1949_v62, %v1948_v61 }
 0x201   : > { %v2391_v4 = vmul.f32 -1.442695, %v1281_v3  ;;  %v1951_v3 = vld [vmem:[%s3412_s12 + $0x18] sm:$0xff] }
 0x203   : > { %2811 = vpow2.f32 %v2391_v4  ;;  %v1952_v4 = vld [vmem:[%s3413_s13] sm:$0xff] }
 0x204   : > { %v1424_v7 = vpop.f32.mrb[8].mxu1 }
 0x205   : > { %v1425_v8 = vadd.f32 %v1424_v7, %v1354_v58  ;;  %v2609_v9 = vpop.f32.mrb[9].mxu1 }
 0x207   : > { %v1434_v10 = vadd.f32 %v2394_v5, %v1425_v8  ;;  %v1953_v5 = vld [vmem:[%s3413_s13 + $0x8] sm:$0xff]  ;;  %v2767_v8 = vpack.c.bf16 %v1951_v3, %v1950_v1 }
 0x208   : > { %v2758_v9 = vpack.c.bf16 %v1953_v5, %v1952_v4  ;;  %v2230_v5 = vld [vmem:[#allocation4] sm:$0x1] }
 0x209   : > { %v2395_v11 = vmul.f32 -1.442695, %v1434_v10 }
 0x20b   : > { %2813 = vpow2.f32 %v2395_v11  ;;  %v1954_v11 = vld [vmem:[%s3413_s13 + $0x10] sm:$0xff] }
 0x20c   : > { %v1589_v12 = vpop.f32.mrb[10].mxu1 }
 0x20d   : > { %v2812_v13 = vpop.eup %2811  ;;  %v2631_v15 = vpop.f32.mrb[11].mxu1  ;;  %v1590_v20 = vadd.f32 %v2398_v17, %v1589_v12  ;;  %v1955_v12 = vld [vmem:[%s3413_s13 + $0x18] sm:$0xff] }
 0x20e   : > { %v1285_v16 = vadd.f32 1.0, %v2812_v13  ;;  %v2761_v13 = vpack.c.bf16 %v1955_v12, %v1954_v11 }
 0x210   : > { %2815 = vrcp.f32 %v1285_v16 }
 0x215   : > { %v2814_v18 = vpop.eup %2813 }
 0x216   : > { %v1438_v19 = vadd.f32 1.0, %v2814_v18 }
 0x218   : > { %2817 = vrcp.f32 %v1438_v19 }
 0x21a   : > { %v2816_v23 = vpop.eup %2815 }
 0x21b   : > { %v1593_v25 = vmul.f32 %v2816_v23, %v1590_v20 }
 0x21d   : > { %v1594_v26 = vadd.f32 %v1593_v25, %v1514_v24  ;;  %v2114_v24 = vld [vmem:[%s3415_s15] sm:$0xff]  ;;  %v2115_v25 = vld [vmem:[%s3415_s15 + $0x8] sm:$0xff] }
 0x21e   : > { %v2770_v27 = vpack.c.bf16 %v2115_v25, %v2114_v24 }
 0x21f   : > { %2819 = vtanh.f32 %v1594_v26  ;;  %v2116_v26 = vld [vmem:[%s3415_s15 + $0x10] sm:$0xff] }
 0x222   : > { %v2818_v30 = vpop.eup %2817 }
 0x223   : > { %v1596_v33 = vsub.f32 1.0, %v2818_v30  ;;  %v1598_v35 = vmul.f32 %v2818_v30, %v3148_v52  ;;  %v2773_v30 = vpack.c.bf16 %v2117_v28, %v2116_v26 }
 0x229   : > { %v2820_v34 = vpop.eup %2819 }
 0x22a   : > { %v1597_v36 = vmul.f32 %v2820_v34, %v1596_v33 }
 0x22c   : > { %v3269_v38 = vadd.f32 %v1598_v35, %v1597_v36 }
 0x22e   : > { %1602 = vst.msk [vmem:[#allocation3] sm:$0x3] %vm1600_vm4, %v3269_v38  ;;  %v1612_v39 = vrot.slane %v3269_v38, %v1611_v37 }
 0x230   : > { %v1620_v40 = vrot.slane %v1612_v39, %v1611_v37  ;;  %v1613_v42 = vcombine.high %v1612_v39, %v1612_v39 }
 0x232   : > { %2635 = vmatmul.mubr.msk.f32.vlgmr.msra.gmra.mrb[12].mxu1 %vm628_vm3, %v1620_v40  ;;  %v1627_v52 = vrot.slane %v1613_v42, %v1611_v37  ;;  %v2409_v37 = vld [vmem:[%s3416_s16] ss:$0 sm:$0xff]  ;;  %v2880_v42 = vmov 0  }
 0x233   : > { %2638 = vmatpush3.xpose.msk.msra.mxu1 %vm628_vm3, %v1604_v41  ;;  %2639 = vmatprep.mubr.msk.f32.mxu1 %vm2877_vm2, %v2878_v14 }
 0x234   : > { %2647 = vmatprep.subr.mxu1 %v2878_v14  ;;  %2800 = vset.pattern.permute.xlu0 %v2880_v42 }
 0x236   : > { %2640 = vmatmul.mubr.msk.f32.vlgmr.msra.gmra.mrb[14].mxu1 %vm628_vm3, %v1627_v52 }
 0x237   : > { %2648 = vmatpush3.msra.mxu1 %v1604_v41  ;;  %2649 = vmatprep.mubr.msk.f32.mxu1 %vm2877_vm2, %v2878_v14  ;;  %v2213_v41 = vld [vmem:[%s582_s23] sm:$0x3] }
 0x238   : > { %2763 = vmatprep.subr.bf16.mxu1 %v2876_v6 }
 0x305   : > { %v1699_v43 = vpop.f32.mrb[12].mxu1 }
 0x306   : > { %v2636_v44 = vpop.f32.mrb[13].mxu1  ;;  %v1779_v48 = vsel %vm1778_vm5, %v1699_v43, -inf }
 0x309   : > { %v1774_v45 = vpop.f32.mrb[14].mxu1 }
 0x30a   : > { %v2641_v46 = vpop.f32.mrb[15].mxu1  ;;  %v1782_v47 = vsel %vm1778_vm5, %v1774_v45, -inf }
 0x30b   : > { %1783 = vmax.xlane.f32.xlu0 %v1782_v47 }
 0x30f   : > { %1780 = vmax.xlane.f32.xlu0 %v1779_v48 }
 0x398   : > { %v1784_v49 = vpop.xlane.xlu0 %1783 }
 0x399   : > { %v1786_v21 = vsub.f32 %v1774_v45, %v1784_v49  ;;  %v2215_v49 = vand.u32 127, %v1609_v29 }
 0x39b   : > { %v1789_v50 = vmul.f32 1.442695, %v1786_v21 }
 0x39c   : > { %v1781_v51 = vpop.xlane.xlu0 %1780 }
 0x39d   : > { %2821 = vpow2.f32 %v1789_v50  ;;  %v1785_v53 = vsub.f32 %v1699_v43, %v1781_v51 }
 0x39f   : > { %v1787_v54 = vmul.f32 1.442695, %v1785_v53 }
 0x3a1   : > { %2823 = vpow2.f32 %v1787_v54 }
 0x3a7   : > { %v2822_v55 = vpop.eup %2821 }
 0x3a8   : > { %v1794_v56 = vsel %vm1778_vm5, %v2822_v55, 0.0 }
 0x3a9   : > { %1795 = vadd.xlane.f32.xlu1 %v1794_v56 }
 0x3ab   : > { %v2824_v57 = vpop.eup %2823 }
 0x3ac   : > { %v1791_v58 = vsel %vm1778_vm5, %v2824_v57, 0.0 }
 0x3ad   : > { %1792 = vadd.xlane.f32.xlu1 %v1791_v58 }
 0x436   : > { %v1796_v59 = vpop.xlane.xlu1 %1795 }
 0x437   : > { %2825 = vrcp.f32 %v1796_v59 }
 0x43a   : > { %v1793_v60 = vpop.xlane.xlu1 %1792 }
 0x43b   : > { %2827 = vrcp.f32 %v1793_v60 }
 0x441   : > { %v2826_v63 = vpop.eup %2825 }
 0x442   : > { %v1800_v2 = vmul.f32 %v2826_v63, %v2822_v55 }
 0x444   : > { %2650 = vmatmul.mubr.msk.f32.vlgmr.msra.gmra.mrb[16].mxu1 %vm1801_vm6, %v1800_v2 }
 0x445   : > { %v2828_v7 = vpop.eup %2827  ;;  %2765 = vmatpush3.bf16.msra.mxu1 %v2764_v0  ;;  %2671 = vmatprep.mubr.msk.f32.mxu1 %vm2877_vm2, %v2878_v14 }
 0x446   : > { %v1799_v10 = vmul.f32 %v2828_v7, %v2824_v57  ;;  %2766 = vmatprep.subr.bf16.mxu1 %v2876_v6  ;;  %v2226_v57 = vstv %s2983_s28 }
 0x448   : > { %2645 = vmatmul.mubr.msk.f32.vlgmr.msra.gmra.mrb[12].mxu0 %vm1801_vm6, %v1799_v10 }
 0x449   : > { %2768 = vmatpush3.bf16.msra.mxu1 %v2767_v8  ;;  %2759 = vmatpush3.bf16.msra.mxu0 %v2758_v9 }
 0x44a   : > { %2760 = vmatprep.subr.bf16.mxu0 %v2876_v6  ;;  %2660 = vmatprep.mubr.msk.f32.mxu0 %vm2877_vm2, %v2878_v14 }
 0x44c   : > { %2672 = vmatmul.mubr.msk.f32.vlgmr.msra.gmra.mrb[18].mxu1 %vm628_vm3, %v3269_v38 }
 0x44d   : > { %2762 = vmatpush3.bf16.msra.mxu0 %v2761_v13 }
 0x44e   : > { %2769 = vmatprep.subr.bf16.mxu0 %v2876_v6 }
 0x517   : > { %v1944_v15 = vpop.f32.mrb[16].mxu1 }
 0x518   : > { %v2651_v16 = vpop.f32.mrb[17].mxu1  ;;  %v1958_v17 = vrot.slane %v1944_v15, 7 }
 0x51b   : > { %v1871_v18 = vpop.f32.mrb[12].mxu0 }
 0x51c   : > { %v1960_v19 = vsel %vm1959_vm7, %v1958_v17, %v1871_v18  ;;  %v2646_v20 = vpop.f32.mrb[13].mxu0 }
 0x51d   : > { %2661 = vmatmul.mubr.msk.f32.vlgmr.msra.gmra.mrb[14].mxu0 %vm628_vm3, %v1960_v19 }
 0x51e   : > { %2682 = vmatprep.mubr.msk.f32.mxu0 %vm2877_vm2, %v2878_v14  ;;  %2771 = vmatpush3.bf16.msra.mxu0 %v2770_v27 }
 0x51f   : > { %v2101_v22 = vpop.f32.mrb[18].mxu1  ;;  %2772 = vmatprep.subr.bf16.mxu0 %v2876_v6 }
 0x520   : > { %v2673_v23 = vpop.f32.mrb[19].mxu1 }
 0x522   : > { %2774 = vmatpush3.bf16.msra.mxu0 %v2773_v30 }
 0x5f0   : > { %v2029_v31 = vpop.f32.mrb[14].mxu0 }
 0x5f1   : > { %v2102_v33 = vadd.f32 %v2101_v22, %v2029_v31  ;;  %v2662_v34 = vpop.f32.mrb[15].mxu0 }
 0x5f3   : > { %v2112_v35 = vadd.f32 %v2408_v32, %v2102_v33 }
 0x5f5   : > { %2829 = vtanh.f32 %v2112_v35 }
 0x5ff   : > { %v2830_v36 = vpop.eup %2829 }
 0x600   : > { %2683 = vmatmul.mubr.msk.f32.vlgmr.msra.gmra.mrb[16].mxu0 %vm628_vm3, %v2830_v36 }
 0x6d3   : > { %v2194_v6 = vpop.f32.mrb[16].mxu0 }
 0x6d4   : > { %v2195_v38 = vadd.f32 %v2409_v37, %v2194_v6  ;;  %v2684_v39 = vpop.f32.mrb[17].mxu0 }
 0x6d6   : > { %v2200_v40 = vsel %vm2198_vm8, %v2195_v38, -inf  ;;  %2199 = vst.msk [vmem:[%s586_s26] sm:$0x3] %vm2198_vm8, %v2195_v38  ;;  %s3428_s26 = sld [smem:[#allocation11_spill]] }
 0x6d7   : > { %2201 = vmax.xlane.f32.xlu0 %v2200_v40 }
 0x6dc   : > { %v2225_v56 = vld [vmem:[%s3428_s26] sm:$0x3] }
 0x6dd   : > { %vm2227_vm10 = vcmp.gt.s32.totalorder %v2225_v56, %v2226_v57 }
 0x6de   : > { %v2411_v59 = vsel %vm2227_vm10, 1.0, %v2878_v14  ;;  %v2251_v14 = vld [vmem:[%s3429_s27] sm:$0x3] (!%p2412_p5) }
 0x6df   : > { %v2252_v9 = vsel (!%p2412_p5), %vm2232_vm11, %v2251_v14, 0 }
 0x6e0   : > { %v2254_v10 = vshrl.u32 (!%p2412_p5), %v2252_v9, 16  ;;  %v2253_v11 = vand.u32 (!%p2412_p5), 65535, %v2252_v9 }
 0x6e2   : > { %v2256_v12 = vcvt.s32.f32 (!%p2412_p5), %v2254_v10  ;;  %v2255_v13 = vcvt.s32.f32 (!%p2412_p5), %v2253_v11 }
 0x6ed   : > { %2217 = vperm.xlu0 %2800, %v2213_v41  }
 0x70c   : > { %2259 = vadd.xlane.f32.xlu0 (!%p2412_p5), %v2256_v12 }
 0x710   : > { %2257 = vadd.xlane.f32.xlu0 (!%p2412_p5), %v2255_v13 }
 0x764   : > { %v2202_v52 = vpop.xlane.xlu0 %2201 }
 0x765   : > { %v2203_v43 = vsub.f32 %v2195_v38, %v2202_v52 }
 0x767   : > { %v2204_v44 = vmul.f32 1.442695, %v2203_v43 }
 0x769   : > { %2831 = vpow2.f32 %v2204_v44 }
 0x76c   : > { %v2218_v50 = vpop.permute.xlu0 %2217 }
 0x76d   : > { %vm2219_vm9 = vcmp.eq.s32.totalorder %v2215_v49, %v2218_v50 }
 0x773   : > { %v2832_v45 = vpop.eup %2831 }
 0x774   : > { %v2206_v46 = vsel %vm2198_vm8, %v2832_v45, 0.0 }
 0x775   : > { %2207 = vadd.xlane.f32.xlu1 %v2206_v46 }
 0x799   : > { %v2260_v15 = vpop.xlane.xlu0 (!%p2412_p5), %2259 }
 0x79a   : > { %v2262_v16 = vcvt.f32.s32 (!%p2412_p5), %v2260_v15 }
 0x79c   : > { %v2263_v18 = vshll.u32 (!%p2412_p5), %v2262_v16, 16 }
 0x79d   : > { %v2258_v17 = vpop.xlane.xlu0 (!%p2412_p5), %2257 }
 0x79e   : > { %v2261_v19 = vcvt.f32.s32 (!%p2412_p5), %v2258_v17 }
 0x7a0   : > { %v2264_v20 = vadd.s32 (!%p2412_p5), %v2263_v18, %v2261_v19 }
 0x7a2   : > { %v2265_v22 = vrot.slane (!%p2412_p5), %v2264_v20, 4 }
 0x7a4   : > { %v2266_v23 = vadd.s32 (!%p2412_p5), %v2265_v22, %v2264_v20 }
 0x7a6   : > { %v2267_v24 = vrot.slane (!%p2412_p5), %v2266_v23, 2 }
 0x7a8   : > { %v2268_v25 = vadd.s32 (!%p2412_p5), %v2267_v24, %v2266_v23 }
 0x7aa   : > { %v2269_v26 = vrot.slane (!%p2412_p5), %v2268_v25, 1 }
 0x7ac   : > { %v2270_v27 = vadd.s32 (!%p2412_p5), %v2269_v26, %v2268_v25 }
 0x802   : > { %v2208_v47 = vpop.xlane.xlu1 %2207 }
 0x803   : > { %2833 = vlog2.f32 %v2208_v47 }
 0x80d   : > { %v2834_v48 = vpop.eup %2833 }
 0x80e   : > { %v2210_v21 = vmul.f32 0.6931472, %v2834_v48 }
 0x810   : > { %v2211_v51 = vadd.f32 %v2210_v21, %v2202_v52 }
 0x812   : > { %v2212_v53 = vsub.f32 %v2195_v38, %v2211_v51 }
 0x814   : > { %v2220_v54 = vsel %vm2219_vm9, %v2212_v53, 0.0 }
 0x815   : > { %v2221_v55 = vsel %vm2198_vm8, %v2220_v54, 0.0 }
 0x816   : > { %2222 = vadd.xlane.f32.xlu1 %v2221_v55 }
 0x8a3   : > { %v2223_v58 = vpop.xlane.xlu1 %2222 }
 0x8a4   : > { %v2224_v60 = vsub.f32 0.0, %v2223_v58 }
 0x8a6   : > { %v2231_v29 = vmul.f32 %v2411_v59, %v2224_v60 }
 0x8a8   : > { %v2233_v61 = vsel %vm2232_vm11, %v2231_v29, 0.0 }
 0x8a9   : > { %2234 = vadd.xlane.f32.xlu1 %v2233_v61 }
 0x936   : > { %v2235_v62 = vpop.xlane.xlu1 %2234 }
 0x937   : > { %v2236_v63 = vrot.slane %v2235_v62, 4 }
 0x939   : > { %v2237_v0 = vadd.f32 %v2236_v63, %v2235_v62 }
 0x93b   : > { %v2238_v1 = vrot.slane %v2237_v0, 2 }
 0x93d   : > { %v2239_v2 = vadd.f32 %v2238_v1, %v2237_v0 }
 0x93f   : > { %v2240_v3 = vrot.slane %v2239_v2, 1 }
 0x941   : > { %v2241_v4 = vadd.f32 %v2240_v3, %v2239_v2 }
 0x943   : > { %2775 = vpush %v2241_v4 }
 0x944   : > { %2777 = vpush (!%p2412_p5), %v2270_v27 }
 0x972   : > { %2250 = sbr.rel (%p2412_p5) target bundleno = 2439 (0x987), region = 96 }
 0x974   : > { %s2776_s21 = spop %2775 }
 0x975   : > { %v2243_v7 = vstv %s2776_s21  ;;  %s2778_s20 = spop (!%p2412_p5), %2777 }
 0x976   : > { %v2244_v8 = vadd.f32 %v2243_v7, %v2230_v5  ;;  %s2272_s24 = scvt.s32.f32 (!%p2412_p5), %s2778_s20 }
 0x978   : > { %2246 = vst.msk [vmem:[#allocation4] sm:$0x1] %vm2245_vm12, %v2244_v8  ;;  %v2274_v28 = vstv (!%p2412_p5), %s2272_s24 }
 0x979   : > { %2835 = vrcp.f32 %v2274_v28 }
 0x97f   : > { %v2273_v30 = vld [vmem:[#allocation4] sm:$0x1] }
 0x983   : > { %v2836_v31 = vpop.eup %2835 }
 0x984   : > { %v2276_v32 = vmul.f32 %v2836_v31, %v2273_v30 }
 0x986   : > { %2277 = vst.msk [vmem:[#allocation5] sm:$0x1] %vm2245_vm12, %v2276_v32 }
 0x987 PF: > { %p2783_p6 = scmp.eq.s32.totalorder %s2983_s28, 7  ;;  %s2881_s25 = smov [#allocation5]  }
 0x988   : > { %s2292_s29 = sshll.u32 %s2881_s25, 4  ;;  %s2293_s29 = int_to_ptr.vmem [resolvable:$true] %s2292_s29 }
 0x989   : > { %s2837_s0 = scalar_lea.vmem %s2293_s29, 16  ;;  %s2843_s19 = scalar_lea.vmem %s2293_s29, 32 }
 0x98a   : > { %p2838_p7 = scmp.ne.s32.totalorder %s2293_s29, %s2837_s0  ;;  %p2844_p10 = scmp.lt.s32.totalorder %s2293_s29, %s2293_s29 }
 0x98b   : > { %p2845_p11 = scmp.lt.s32.totalorder %s2843_s19, %s2837_s0 }
 0x98c   : > { %p2839_p8 = pnand %p2838_p7, %p2783_p6 }
 0x98d   : > { %p2846_p12 = por %p2845_p11, %p2844_p10 }
 0x98e   : > { %p2840_p9 = pneg %p2839_p8 }
 0x990   : > { %p2847_p13 = pnand %p2846_p12, %p2840_p9 }
 0x992   : > { %2850 = shalt.err (!%p2847_p13)
}
 0x993   : > { %s2851_s23 = scalar_lea.hbm %s3418_s18, 16 }
 0x994   : > { %p2852_p0 = scmp.ne.s32.totalorder %s3418_s18, %s2851_s23  ;;  %p2857_p3 = scmp.lt.u32.totalorder %s2851_s23, %s3418_s18 }
 0x996   : > { %p2853_p1 = pnand %p2852_p0, %p2783_p6 }
 0x998   : > { %p2854_p2 = pneg %p2853_p1 }
 0x99a   : > { %p2859_p4 = pnand %p2857_p3, %p2854_p2 }
 0x99c   : > { %2862 = shalt.err (!%p2859_p4)
}
 0x99d   : > { %2780 = dma.vmem_to_hbm [thread:$0]  (%p2783_p6), %s2293_s29, 16, %s3418_s18, [#allocation6]  }
 0x99e   : > { %2868 = dma.done.wait (%p2783_p6), [#allocation6], 16  }
 0x99f   : > { %2870 = vsyncadd (%p2783_p6), [#allocation6], 4294967280 }
 0x9a0 PF: > { %s3430_s24 = sld [smem:[#allocation8_spill]] }
 0x9a6   : > { %s30_s27 = sadd.s32 1, %s3430_s24  }
 0x9a7   : > { %p27_p5 = scmp.ge.s32.totalorder %s30_s27, 10  }
 0x9a9   :  { %29 = sbr.rel (!%p27_p5) target bundleno = 5 (0x5), region = 138 }
 0x9b0   :  { %2312 = vsyncpa [#allocation6], 1 }
 0x9b1   :  { %2314 = vsyncpa [#allocation6 + $0x1], 1 }

</bundles_post_ra>
